<compile_context>
chip_gen: v7x
topology: tpu7x:2x2x1
jax: 0.10.0
libtpu: 0.0.40
codegen_flags: <defaults>
</compile_context>

<pallas_src>
import functools

import jax
import jax.numpy as jnp
from jax.experimental import pallas as pl
from jax.experimental.pallas import tpu as pltpu

MATMUL_DTYPE = jnp.bfloat16     # conv matmul operand dtype; accumulation is always f32


# -----------------------------------------------------------------------------
# Tap bookkeeping for the 3x3 / padding=1 convolutions, in flattened (C, H*W) layout.
# Tap order t = (dy+1)*3 + (dx+1), dy/dx in {-1,0,1}.
# -----------------------------------------------------------------------------
def _tap_offsets(W):
    return [dy * W + dx for dy in (-1, 0, 1) for dx in (-1, 0, 1)]


def _tap_masks(H, W):
    """(9, H*W) f32; 1 where the tap's input pixel is inside the image, 0 where the conv's
    zero-padding applies (also kills the lane-roll wrap-around)."""
    p = jnp.arange(H * W)
    row, col = p // W, p % W
    masks = []
    for dy in (-1, 0, 1):
        for dx in (-1, 0, 1):
            masks.append((row + dy >= 0) & (row + dy < H) &
                         (col + dx >= 0) & (col + dx < W))
    return jnp.stack(masks).astype(jnp.float32)


# -----------------------------------------------------------------------------
# Fused BasicBlock kernel: one grid step per batch element, everything in (C, H*W) slabs.
# -----------------------------------------------------------------------------
def _basic_block_kernel(x_ref, masks_ref, wc1_ref, s1_ref, b1_ref,
                        wc2_ref, s2_ref, b2_ref, w1_ref, w2_ref, wsa_ref,
                        o_ref, *, H, W):
    f32 = jnp.float32
    HW = H * W
    offs = _tap_offsets(W)
    masks = masks_ref[...]                                     # (9, HW) f32

    def shift(a, t):
        # a: (rows, HW).  Returns a[:, p + offs[t]] with zeros where the 3x3 padding applies.
        b = a if offs[t] == 0 else jnp.roll(a, -offs[t], axis=1)
        return b * masks[t:t + 1, :]

    def conv3x3_bn(f, w_ref, s_ref, b_ref, relu):
        # im2col: one lane-dense (9*Cin, HW) patch matrix -> single K = 9*Cin MXU matmul.
        patches = jnp.concatenate([shift(f, t) for t in range(9)], axis=0)
        y = jnp.dot(w_ref[...], patches.astype(w_ref.dtype),
                    preferred_element_type=f32)                # (Cout, HW) f32
        y = y * s_ref[...] + b_ref[...]                        # folded BN, (Cout,1) broadcast
        return jnp.maximum(y, 0.0) if relu else y

    x = x_ref[...]                                             # (C, HW) f32 (also the residual)
    y = conv3x3_bn(x, wc1_ref, s1_ref, b1_ref, relu=True)
    y = conv3x3_bn(y, wc2_ref, s2_ref, b2_ref, relu=False)

    # ---- channel attention: avg & max pool over pixels -> shared 2-layer MLP -> sigmoid ----
    pooled = jnp.concatenate([jnp.mean(y, axis=1, keepdims=True),
                              jnp.max(y, axis=1, keepdims=True)], axis=1)          # (C, 2)
    h = jnp.maximum(jnp.dot(w1_ref[...], pooled, preferred_element_type=f32), 0.0)  # (Cr, 2)
    z = jnp.dot(w2_ref[...], h, preferred_element_type=f32)                         # (C, 2)
    ca = jax.nn.sigmoid(z[:, 0:1] + z[:, 1:2])                                       # (C, 1)
    y = y * ca

    # ---- spatial attention: 3x3 conv (pad=1, no bias) over [mean_c, max_c] -> sigmoid ----
    avg_c = jnp.mean(y, axis=0, keepdims=True)                 # (1, HW)
    max_c = jnp.max(y, axis=0, keepdims=True)                  # (1, HW)
    sa = jnp.zeros((1, HW), f32)
    for t in range(9):                                         # 18 scalar MACs on the VPU
        sa = sa + wsa_ref[t] * shift(avg_c, t) + wsa_ref[9 + t] * shift(max_c, t)
    y = y * jax.nn.sigmoid(sa)

    # ---- residual add + final ReLU ----
    o_ref[...] = jnp.maximum(y + x, 0.0)


# -----------------------------------------------------------------------------
# Wrapper: NCHW in / NCHW out, no transposes (only free reshapes), one pallas_call.
# -----------------------------------------------------------------------------
@jax.jit
def basic_block_forward(x_nchw, params):
    N, C, H, W = x_nchw.shape
    HW = H * W
    Cr = params["w1"].shape[0]

    x = x_nchw.reshape(N, C, HW)                               # pixels-in-lanes, free reshape
    masks = _tap_masks(H, W)                                   # (9, HW)

    def conv_mat(w_hwio):                                      # (3,3,Cin,Cout) -> (Cout, 9*Cin)
        return jnp.transpose(w_hwio, (3, 0, 1, 2)).reshape(C, 9 * C).astype(MATMUL_DTYPE)

    wc1 = conv_mat(params["w_conv1"])
    wc2 = conv_mat(params["w_conv2"])
    s1 = params["scale1"].reshape(C, 1)
    b1 = params["bias1"].reshape(C, 1)
    s2 = params["scale2"].reshape(C, 1)
    b2 = params["bias2"].reshape(C, 1)
    wsa = params["wsa"].reshape(18)                            # index = c*9 + ky*3 + kx

    kernel = functools.partial(_basic_block_kernel, H=H, W=W)
    rep = lambda n: (0, 0)                                     # parameters: same block each step
    out = pl.pallas_call(
        kernel,
        out_shape=jax.ShapeDtypeStruct((N, C, HW), jnp.float32),
        grid=(N,),
        in_specs=[
            pl.BlockSpec((None, C, HW), lambda n: (n, 0, 0)),  # x (and residual), lane-dense
            pl.BlockSpec((9, HW), rep),                        # boundary masks
            pl.BlockSpec((C, 9 * C), rep),                     # conv1 weight (im2col form, bf16)
            pl.BlockSpec((C, 1), rep),                         # bn1 scale
            pl.BlockSpec((C, 1), rep),                         # bn1 bias
            pl.BlockSpec((C, 9 * C), rep),                     # conv2 weight
            pl.BlockSpec((C, 1), rep),                         # bn2 scale
            pl.BlockSpec((C, 1), rep),                         # bn2 bias
            pl.BlockSpec((Cr, C), rep),                        # channel-attn fc1
            pl.BlockSpec((C, Cr), rep),                        # channel-attn fc2
            pl.BlockSpec(memory_space=pltpu.MemorySpace.SMEM), # 18 spatial-attn tap weights
        ],
        out_specs=pl.BlockSpec((None, C, HW), lambda n: (n, 0, 0)),
        compiler_params=pltpu.CompilerParams(dimension_semantics=("parallel",)),
    )(x, masks, wc1, s1, b1, wc2, s2, b2, params["w1"], params["w2"], wsa)
    return out.reshape(N, C, H, W)


# -----------------------------------------------------------------------------
# Pure-JAX reference (f32) for correctness check
# -----------------------------------------------------------------------------
def ref_forward(x_nchw, p):
    x = jnp.transpose(x_nchw, (0, 2, 3, 1))                    # NHWC

    def conv3(a, w):
        return jax.lax.conv_general_dilated(
            a, w, (1, 1), ((1, 1), (1, 1)),
            dimension_numbers=("NHWC", "HWIO", "NHWC"))

    out = conv3(x, p["w_conv1"]) * p["scale1"] + p["bias1"]
    out = jnp.maximum(out, 0.0)
    out = conv3(out, p["w_conv2"]) * p["scale2"] + p["bias2"]

    avg = out.mean(axis=(1, 2))
    mx = out.max(axis=(1, 2))

    def mlp(v):
        return jnp.maximum(v @ p["w1"].T, 0.0) @ p["w2"].T

    ca = jax.nn.sigmoid(mlp(avg) + mlp(mx))
    out = out * ca[:, None, None, :]

    st = jnp.stack([out.mean(axis=-1), out.max(axis=-1)], axis=-1)         # (N,H,W,2)
    wsa_hwio = jnp.transpose(p["wsa"], (1, 2, 0))[..., None]               # (3,3,2,1)
    sa = jax.lax.conv_general_dilated(
        st, wsa_hwio, (1, 1), ((1, 1), (1, 1)),
        dimension_numbers=("NHWC", "HWIO", "NHWC"))
    out = out * jax.nn.sigmoid(sa)
    out = jnp.maximum(out + x, 0.0)
    return jnp.transpose(out, (0, 3, 1, 2))


if __name__ == "__main__":
    f32 = jnp.float32
    N, C, H, W = 2, 32, 16, 16          # inplanes = planes = 32 (so planes // 16 = 2 > 0)
    Cr = C // 16
    eps = 1e-5

    keys = jax.random.split(jax.random.PRNGKey(0), 12)

    def nrm(k, shape, scale):
        return jax.random.normal(k, shape, f32) * scale

    params = {}
    params["w_conv1"] = nrm(keys[0], (3, 3, C, C), (2.0 / (9 * C)) ** 0.5)   # HWIO
    params["w_conv2"] = nrm(keys[1], (3, 3, C, C), (2.0 / (9 * C)) ** 0.5)
    for i, (kg, kb, km, kv) in enumerate(
            [(keys[2], keys[3], keys[4], keys[5]),
             (keys[6], keys[7], keys[8], keys[9])], start=1):
        gamma = 1.0 + 0.1 * jax.random.normal(kg, (C,), f32)
        beta = 0.1 * jax.random.normal(kb, (C,), f32)
        mean = 0.05 * jax.random.normal(km, (C,), f32)
        var = jax.random.uniform(kv, (C,), f32, minval=0.5, maxval=1.5)
        scale = gamma / jnp.sqrt(var + eps)
        params[f"scale{i}"] = scale
        params[f"bias{i}"] = beta - mean * scale
    params["w1"] = nrm(keys[10], (Cr, C), (2.0 / C) ** 0.5)      # ChannelAttention fc1 (Cr, C)
    params["w2"] = nrm(keys[11], (C, Cr), (2.0 / Cr) ** 0.5)     # ChannelAttention fc2 (C, Cr)
    params["wsa"] = nrm(jax.random.PRNGKey(42), (2, 3, 3), (2.0 / 18.0) ** 0.5)  # SA conv (in=2,k=3)

    x = jax.random.normal(jax.random.PRNGKey(1), (N, C, H, W), f32)   # NCHW like PyTorch

    y = jax.block_until_ready(basic_block_forward(x, params))
    y_ref = ref_forward(x, params)

    assert y.shape == (N, C, H, W), y.shape
    err = float(jnp.max(jnp.abs(y - y_ref)))
    # bf16 matmul operands with f32 accumulation -> tolerance loosened vs. the pure-f32 version.
    assert err < 5e-2, f"max abs err {err}"
    print("KERNEL_OK")
</pallas_src>

<mosaic_0001>
module attributes {stable_mosaic.version = 11 : i64} {
  func.func @_basic_block_kernel(%arg0: i32, %arg1: memref<1x32x256xf32, #tpu.memory_space<vmem>>, %arg2: memref<9x256xf32, #tpu.memory_space<vmem>>, %arg3: memref<32x288xbf16, #tpu.memory_space<vmem>>, %arg4: memref<32x1xf32, #tpu.memory_space<vmem>>, %arg5: memref<32x1xf32, #tpu.memory_space<vmem>>, %arg6: memref<32x288xbf16, #tpu.memory_space<vmem>>, %arg7: memref<32x1xf32, #tpu.memory_space<vmem>>, %arg8: memref<32x1xf32, #tpu.memory_space<vmem>>, %arg9: memref<2x32xf32, #tpu.memory_space<vmem>>, %arg10: memref<32x2xf32, #tpu.memory_space<vmem>>, %arg11: memref<18xf32, #tpu.memory_space<smem>>, %arg12: memref<1x32x256xf32, #tpu.memory_space<vmem>>) attributes {dimension_semantics = [#tpu.dimension_semantics<parallel>], iteration_bounds = array<i64: 2>, scalar_prefetch = 0 : i64, scratch_operands = 0 : i64, tpu.core_type = #tpu.core_type<tc>, window_params = [{transform_indices = @transform_0, window_bounds = array<i64: 1, 32, 256>}, {pipeline_mode = #tpu.pipeline_mode<synchronous>, transform_indices = @transform_1, window_bounds = array<i64: 9, 256>}, {pipeline_mode = #tpu.pipeline_mode<synchronous>, transform_indices = @transform_2, window_bounds = array<i64: 32, 288>}, {pipeline_mode = #tpu.pipeline_mode<synchronous>, transform_indices = @transform_3, window_bounds = array<i64: 32, 1>}, {pipeline_mode = #tpu.pipeline_mode<synchronous>, transform_indices = @transform_4, window_bounds = array<i64: 32, 1>}, {pipeline_mode = #tpu.pipeline_mode<synchronous>, transform_indices = @transform_5, window_bounds = array<i64: 32, 288>}, {pipeline_mode = #tpu.pipeline_mode<synchronous>, transform_indices = @transform_6, window_bounds = array<i64: 32, 1>}, {pipeline_mode = #tpu.pipeline_mode<synchronous>, transform_indices = @transform_7, window_bounds = array<i64: 32, 1>}, {pipeline_mode = #tpu.pipeline_mode<synchronous>, transform_indices = @transform_8, window_bounds = array<i64: 2, 32>}, {pipeline_mode = #tpu.pipeline_mode<synchronous>, transform_indices = @transform_9, window_bounds = array<i64: 32, 2>}, {transform_indices = @transform_10, window_bounds = array<i64: 18>}, {transform_indices = @transform_11, window_bounds = array<i64: 1, 32, 256>}]} {
    %c0 = arith.constant 0 : index
    %c0_0 = arith.constant 0 : index
    %0 = vector.load %arg2[%c0, %c0_0] : memref<9x256xf32, #tpu.memory_space<vmem>>, vector<9x256xf32>
    %c0_1 = arith.constant 0 : index
    %c0_2 = arith.constant 0 : index
    %c0_3 = arith.constant 0 : index
    %1 = vector.load %arg1[%c0_1, %c0_2, %c0_3] : memref<1x32x256xf32, #tpu.memory_space<vmem>>, vector<1x32x256xf32>
    %2 = vector.shape_cast %1 : vector<1x32x256xf32> to vector<32x256xf32>
    %3 = vector.extract_strided_slice %2 {offsets = [0, 239], sizes = [32, 17], strides = [1, 1]} : vector<32x256xf32> to vector<32x17xf32>
    %4 = vector.extract_strided_slice %2 {offsets = [0, 0], sizes = [32, 239], strides = [1, 1]} : vector<32x256xf32> to vector<32x239xf32>
    %5 = tpu.concatenate %3, %4 in 1 : vector<32x17xf32>, vector<32x239xf32> -> vector<32x256xf32>
    %6 = vector.extract_strided_slice %0 {offsets = [0, 0], sizes = [1, 256], strides = [1, 1]} : vector<9x256xf32> to vector<1x256xf32>
    %7 = vector.broadcast %6 : vector<1x256xf32> to vector<32x256xf32>
    %8 = arith.mulf %5, %7 : vector<32x256xf32>
    %9 = vector.extract_strided_slice %2 {offsets = [0, 240], sizes = [32, 16], strides = [1, 1]} : vector<32x256xf32> to vector<32x16xf32>
    %10 = vector.extract_strided_slice %2 {offsets = [0, 0], sizes = [32, 240], strides = [1, 1]} : vector<32x256xf32> to vector<32x240xf32>
    %11 = tpu.concatenate %9, %10 in 1 : vector<32x16xf32>, vector<32x240xf32> -> vector<32x256xf32>
    %12 = vector.extract_strided_slice %0 {offsets = [1, 0], sizes = [1, 256], strides = [1, 1]} : vector<9x256xf32> to vector<1x256xf32>
    %13 = vector.broadcast %12 : vector<1x256xf32> to vector<32x256xf32>
    %14 = arith.mulf %11, %13 : vector<32x256xf32>
    %15 = vector.extract_strided_slice %2 {offsets = [0, 241], sizes = [32, 15], strides = [1, 1]} : vector<32x256xf32> to vector<32x15xf32>
    %16 = vector.extract_strided_slice %2 {offsets = [0, 0], sizes = [32, 241], strides = [1, 1]} : vector<32x256xf32> to vector<32x241xf32>
    %17 = tpu.concatenate %15, %16 in 1 : vector<32x15xf32>, vector<32x241xf32> -> vector<32x256xf32>
    %18 = vector.extract_strided_slice %0 {offsets = [2, 0], sizes = [1, 256], strides = [1, 1]} : vector<9x256xf32> to vector<1x256xf32>
    %19 = vector.broadcast %18 : vector<1x256xf32> to vector<32x256xf32>
    %20 = arith.mulf %17, %19 : vector<32x256xf32>
    %21 = vector.extract_strided_slice %2 {offsets = [0, 255], sizes = [32, 1], strides = [1, 1]} : vector<32x256xf32> to vector<32x1xf32>
    %22 = vector.extract_strided_slice %2 {offsets = [0, 0], sizes = [32, 255], strides = [1, 1]} : vector<32x256xf32> to vector<32x255xf32>
    %23 = tpu.concatenate %21, %22 in 1 : vector<32x1xf32>, vector<32x255xf32> -> vector<32x256xf32>
    %24 = vector.extract_strided_slice %0 {offsets = [3, 0], sizes = [1, 256], strides = [1, 1]} : vector<9x256xf32> to vector<1x256xf32>
    %25 = vector.broadcast %24 : vector<1x256xf32> to vector<32x256xf32>
    %26 = arith.mulf %23, %25 : vector<32x256xf32>
    %27 = vector.extract_strided_slice %0 {offsets = [4, 0], sizes = [1, 256], strides = [1, 1]} : vector<9x256xf32> to vector<1x256xf32>
    %28 = vector.broadcast %27 : vector<1x256xf32> to vector<32x256xf32>
    %29 = arith.mulf %2, %28 : vector<32x256xf32>
    %30 = vector.extract_strided_slice %2 {offsets = [0, 1], sizes = [32, 255], strides = [1, 1]} : vector<32x256xf32> to vector<32x255xf32>
    %31 = vector.extract_strided_slice %2 {offsets = [0, 0], sizes = [32, 1], strides = [1, 1]} : vector<32x256xf32> to vector<32x1xf32>
    %32 = tpu.concatenate %30, %31 in 1 : vector<32x255xf32>, vector<32x1xf32> -> vector<32x256xf32>
    %33 = vector.extract_strided_slice %0 {offsets = [5, 0], sizes = [1, 256], strides = [1, 1]} : vector<9x256xf32> to vector<1x256xf32>
    %34 = vector.broadcast %33 : vector<1x256xf32> to vector<32x256xf32>
    %35 = arith.mulf %32, %34 : vector<32x256xf32>
    %36 = vector.extract_strided_slice %2 {offsets = [0, 15], sizes = [32, 241], strides = [1, 1]} : vector<32x256xf32> to vector<32x241xf32>
    %37 = vector.extract_strided_slice %2 {offsets = [0, 0], sizes = [32, 15], strides = [1, 1]} : vector<32x256xf32> to vector<32x15xf32>
    %38 = tpu.concatenate %36, %37 in 1 : vector<32x241xf32>, vector<32x15xf32> -> vector<32x256xf32>
    %39 = vector.extract_strided_slice %0 {offsets = [6, 0], sizes = [1, 256], strides = [1, 1]} : vector<9x256xf32> to vector<1x256xf32>
    %40 = vector.broadcast %39 : vector<1x256xf32> to vector<32x256xf32>
    %41 = arith.mulf %38, %40 : vector<32x256xf32>
    %42 = vector.extract_strided_slice %2 {offsets = [0, 16], sizes = [32, 240], strides = [1, 1]} : vector<32x256xf32> to vector<32x240xf32>
    %43 = vector.extract_strided_slice %2 {offsets = [0, 0], sizes = [32, 16], strides = [1, 1]} : vector<32x256xf32> to vector<32x16xf32>
    %44 = tpu.concatenate %42, %43 in 1 : vector<32x240xf32>, vector<32x16xf32> -> vector<32x256xf32>
    %45 = vector.extract_strided_slice %0 {offsets = [7, 0], sizes = [1, 256], strides = [1, 1]} : vector<9x256xf32> to vector<1x256xf32>
    %46 = vector.broadcast %45 : vector<1x256xf32> to vector<32x256xf32>
    %47 = arith.mulf %44, %46 : vector<32x256xf32>
    %48 = vector.extract_strided_slice %2 {offsets = [0, 17], sizes = [32, 239], strides = [1, 1]} : vector<32x256xf32> to vector<32x239xf32>
    %49 = vector.extract_strided_slice %2 {offsets = [0, 0], sizes = [32, 17], strides = [1, 1]} : vector<32x256xf32> to vector<32x17xf32>
    %50 = tpu.concatenate %48, %49 in 1 : vector<32x239xf32>, vector<32x17xf32> -> vector<32x256xf32>
    %51 = vector.extract_strided_slice %0 {offsets = [8, 0], sizes = [1, 256], strides = [1, 1]} : vector<9x256xf32> to vector<1x256xf32>
    %52 = vector.broadcast %51 : vector<1x256xf32> to vector<32x256xf32>
    %53 = arith.mulf %50, %52 : vector<32x256xf32>
    %54 = tpu.concatenate %8, %14, %20, %26, %29, %35, %41, %47, %53 in 0 : vector<32x256xf32>, vector<32x256xf32>, vector<32x256xf32>, vector<32x256xf32>, vector<32x256xf32>, vector<32x256xf32>, vector<32x256xf32>, vector<32x256xf32>, vector<32x256xf32> -> vector<288x256xf32>
    %c0_4 = arith.constant 0 : index
    %c0_5 = arith.constant 0 : index
    %55 = vector.load %arg3[%c0_4, %c0_5] : memref<32x288xbf16, #tpu.memory_space<vmem>>, vector<32x288xbf16>
    %56 = arith.truncf %54 : vector<288x256xf32> to vector<288x256xbf16>
    %cst = arith.constant dense<0.000000e+00> : vector<32x256xf32>
    %57 = tpu.matmul %55, %56, %cst {dimension_numbers = #tpu.dot_dimension_numbers<[1], [0], [0], [1], [0, 0, 1, 1], [], []>} : vector<32x288xbf16>, vector<288x256xbf16>, vector<32x256xf32> -> vector<32x256xf32>
    %c0_6 = arith.constant 0 : index
    %c0_7 = arith.constant 0 : index
    %58 = vector.load %arg4[%c0_6, %c0_7] : memref<32x1xf32, #tpu.memory_space<vmem>>, vector<32x1xf32>
    %59 = vector.broadcast %58 : vector<32x1xf32> to vector<32x256xf32>
    %60 = arith.mulf %57, %59 : vector<32x256xf32>
    %c0_8 = arith.constant 0 : index
    %c0_9 = arith.constant 0 : index
    %61 = vector.load %arg5[%c0_8, %c0_9] : memref<32x1xf32, #tpu.memory_space<vmem>>, vector<32x1xf32>
    %62 = vector.broadcast %61 : vector<32x1xf32> to vector<32x256xf32>
    %63 = arith.addf %60, %62 : vector<32x256xf32>
    %cst_10 = arith.constant 0.000000e+00 : f32
    %64 = vector.broadcast %cst_10 : f32 to vector<32x256xf32>
    %65 = arith.maximumf %63, %64 : vector<32x256xf32>
    %66 = vector.extract_strided_slice %65 {offsets = [0, 239], sizes = [32, 17], strides = [1, 1]} : vector<32x256xf32> to vector<32x17xf32>
    %67 = vector.extract_strided_slice %65 {offsets = [0, 0], sizes = [32, 239], strides = [1, 1]} : vector<32x256xf32> to vector<32x239xf32>
    %68 = tpu.concatenate %66, %67 in 1 : vector<32x17xf32>, vector<32x239xf32> -> vector<32x256xf32>
    %69 = vector.extract_strided_slice %0 {offsets = [0, 0], sizes = [1, 256], strides = [1, 1]} : vector<9x256xf32> to vector<1x256xf32>
    %70 = vector.broadcast %69 : vector<1x256xf32> to vector<32x256xf32>
    %71 = arith.mulf %68, %70 : vector<32x256xf32>
    %72 = vector.extract_strided_slice %65 {offsets = [0, 240], sizes = [32, 16], strides = [1, 1]} : vector<32x256xf32> to vector<32x16xf32>
    %73 = vector.extract_strided_slice %65 {offsets = [0, 0], sizes = [32, 240], strides = [1, 1]} : vector<32x256xf32> to vector<32x240xf32>
    %74 = tpu.concatenate %72, %73 in 1 : vector<32x16xf32>, vector<32x240xf32> -> vector<32x256xf32>
    %75 = vector.extract_strided_slice %0 {offsets = [1, 0], sizes = [1, 256], strides = [1, 1]} : vector<9x256xf32> to vector<1x256xf32>
    %76 = vector.broadcast %75 : vector<1x256xf32> to vector<32x256xf32>
    %77 = arith.mulf %74, %76 : vector<32x256xf32>
    %78 = vector.extract_strided_slice %65 {offsets = [0, 241], sizes = [32, 15], strides = [1, 1]} : vector<32x256xf32> to vector<32x15xf32>
    %79 = vector.extract_strided_slice %65 {offsets = [0, 0], sizes = [32, 241], strides = [1, 1]} : vector<32x256xf32> to vector<32x241xf32>
    %80 = tpu.concatenate %78, %79 in 1 : vector<32x15xf32>, vector<32x241xf32> -> vector<32x256xf32>
    %81 = vector.extract_strided_slice %0 {offsets = [2, 0], sizes = [1, 256], strides = [1, 1]} : vector<9x256xf32> to vector<1x256xf32>
    %82 = vector.broadcast %81 : vector<1x256xf32> to vector<32x256xf32>
    %83 = arith.mulf %80, %82 : vector<32x256xf32>
    %84 = vector.extract_strided_slice %65 {offsets = [0, 255], sizes = [32, 1], strides = [1, 1]} : vector<32x256xf32> to vector<32x1xf32>
    %85 = vector.extract_strided_slice %65 {offsets = [0, 0], sizes = [32, 255], strides = [1, 1]} : vector<32x256xf32> to vector<32x255xf32>
    %86 = tpu.concatenate %84, %85 in 1 : vector<32x1xf32>, vector<32x255xf32> -> vector<32x256xf32>
    %87 = vector.extract_strided_slice %0 {offsets = [3, 0], sizes = [1, 256], strides = [1, 1]} : vector<9x256xf32> to vector<1x256xf32>
    %88 = vector.broadcast %87 : vector<1x256xf32> to vector<32x256xf32>
    %89 = arith.mulf %86, %88 : vector<32x256xf32>
    %90 = vector.extract_strided_slice %0 {offsets = [4, 0], sizes = [1, 256], strides = [1, 1]} : vector<9x256xf32> to vector<1x256xf32>
    %91 = vector.broadcast %90 : vector<1x256xf32> to vector<32x256xf32>
    %92 = arith.mulf %65, %91 : vector<32x256xf32>
    %93 = vector.extract_strided_slice %65 {offsets = [0, 1], sizes = [32, 255], strides = [1, 1]} : vector<32x256xf32> to vector<32x255xf32>
    %94 = vector.extract_strided_slice %65 {offsets = [0, 0], sizes = [32, 1], strides = [1, 1]} : vector<32x256xf32> to vector<32x1xf32>
    %95 = tpu.concatenate %93, %94 in 1 : vector<32x255xf32>, vector<32x1xf32> -> vector<32x256xf32>
    %96 = vector.extract_strided_slice %0 {offsets = [5, 0], sizes = [1, 256], strides = [1, 1]} : vector<9x256xf32> to vector<1x256xf32>
    %97 = vector.broadcast %96 : vector<1x256xf32> to vector<32x256xf32>
    %98 = arith.mulf %95, %97 : vector<32x256xf32>
    %99 = vector.extract_strided_slice %65 {offsets = [0, 15], sizes = [32, 241], strides = [1, 1]} : vector<32x256xf32> to vector<32x241xf32>
    %100 = vector.extract_strided_slice %65 {offsets = [0, 0], sizes = [32, 15], strides = [1, 1]} : vector<32x256xf32> to vector<32x15xf32>
    %101 = tpu.concatenate %99, %100 in 1 : vector<32x241xf32>, vector<32x15xf32> -> vector<32x256xf32>
    %102 = vector.extract_strided_slice %0 {offsets = [6, 0], sizes = [1, 256], strides = [1, 1]} : vector<9x256xf32> to vector<1x256xf32>
    %103 = vector.broadcast %102 : vector<1x256xf32> to vector<32x256xf32>
    %104 = arith.mulf %101, %103 : vector<32x256xf32>
    %105 = vector.extract_strided_slice %65 {offsets = [0, 16], sizes = [32, 240], strides = [1, 1]} : vector<32x256xf32> to vector<32x240xf32>
    %106 = vector.extract_strided_slice %65 {offsets = [0, 0], sizes = [32, 16], strides = [1, 1]} : vector<32x256xf32> to vector<32x16xf32>
    %107 = tpu.concatenate %105, %106 in 1 : vector<32x240xf32>, vector<32x16xf32> -> vector<32x256xf32>
    %108 = vector.extract_strided_slice %0 {offsets = [7, 0], sizes = [1, 256], strides = [1, 1]} : vector<9x256xf32> to vector<1x256xf32>
    %109 = vector.broadcast %108 : vector<1x256xf32> to vector<32x256xf32>
    %110 = arith.mulf %107, %109 : vector<32x256xf32>
    %111 = vector.extract_strided_slice %65 {offsets = [0, 17], sizes = [32, 239], strides = [1, 1]} : vector<32x256xf32> to vector<32x239xf32>
    %112 = vector.extract_strided_slice %65 {offsets = [0, 0], sizes = [32, 17], strides = [1, 1]} : vector<32x256xf32> to vector<32x17xf32>
    %113 = tpu.concatenate %111, %112 in 1 : vector<32x239xf32>, vector<32x17xf32> -> vector<32x256xf32>
    %114 = vector.extract_strided_slice %0 {offsets = [8, 0], sizes = [1, 256], strides = [1, 1]} : vector<9x256xf32> to vector<1x256xf32>
    %115 = vector.broadcast %114 : vector<1x256xf32> to vector<32x256xf32>
    %116 = arith.mulf %113, %115 : vector<32x256xf32>
    %117 = tpu.concatenate %71, %77, %83, %89, %92, %98, %104, %110, %116 in 0 : vector<32x256xf32>, vector<32x256xf32>, vector<32x256xf32>, vector<32x256xf32>, vector<32x256xf32>, vector<32x256xf32>, vector<32x256xf32>, vector<32x256xf32>, vector<32x256xf32> -> vector<288x256xf32>
    %c0_11 = arith.constant 0 : index
    %c0_12 = arith.constant 0 : index
    %118 = vector.load %arg6[%c0_11, %c0_12] : memref<32x288xbf16, #tpu.memory_space<vmem>>, vector<32x288xbf16>
    %119 = arith.truncf %117 : vector<288x256xf32> to vector<288x256xbf16>
    %cst_13 = arith.constant dense<0.000000e+00> : vector<32x256xf32>
    %120 = tpu.matmul %118, %119, %cst_13 {dimension_numbers = #tpu.dot_dimension_numbers<[1], [0], [0], [1], [0, 0, 1, 1], [], []>} : vector<32x288xbf16>, vector<288x256xbf16>, vector<32x256xf32> -> vector<32x256xf32>
    %c0_14 = arith.constant 0 : index
    %c0_15 = arith.constant 0 : index
    %121 = vector.load %arg7[%c0_14, %c0_15] : memref<32x1xf32, #tpu.memory_space<vmem>>, vector<32x1xf32>
    %122 = vector.broadcast %121 : vector<32x1xf32> to vector<32x256xf32>
    %123 = arith.mulf %120, %122 : vector<32x256xf32>
    %c0_16 = arith.constant 0 : index
    %c0_17 = arith.constant 0 : index
    %124 = vector.load %arg8[%c0_16, %c0_17] : memref<32x1xf32, #tpu.memory_space<vmem>>, vector<32x1xf32>
    %125 = vector.broadcast %124 : vector<32x1xf32> to vector<32x256xf32>
    %126 = arith.addf %123, %125 : vector<32x256xf32>
    %cst_18 = arith.constant dense<0.000000e+00> : vector<32xf32>
    %127 = vector.multi_reduction <add>, %126, %cst_18 [1] : vector<32x256xf32> to vector<32xf32>
    %128 = vector.shape_cast %127 : vector<32xf32> to vector<32x1xf32>
    %cst_19 = arith.constant 2.560000e+02 : f32
    %129 = vector.broadcast %cst_19 : f32 to vector<32x1xf32>
    %130 = arith.divf %128, %129 : vector<32x1xf32>
    %cst_20 = arith.constant dense<0xFF800000> : vector<32xf32>
    %131 = vector.multi_reduction <maximumf>, %126, %cst_20 [1] : vector<32x256xf32> to vector<32xf32>
    %132 = vector.shape_cast %131 : vector<32xf32> to vector<32x1xf32>
    %133 = tpu.concatenate %130, %132 in 1 : vector<32x1xf32>, vector<32x1xf32> -> vector<32x2xf32>
    %c0_21 = arith.constant 0 : index
    %c0_22 = arith.constant 0 : index
    %134 = vector.load %arg9[%c0_21, %c0_22] : memref<2x32xf32, #tpu.memory_space<vmem>>, vector<2x32xf32>
    %cst_23 = arith.constant dense<0.000000e+00> : vector<2x2xf32>
    %135 = tpu.matmul %134, %133, %cst_23 {dimension_numbers = #tpu.dot_dimension_numbers<[1], [0], [0], [1], [0, 0, 1, 1], [], []>} : vector<2x32xf32>, vector<32x2xf32>, vector<2x2xf32> -> vector<2x2xf32>
    %cst_24 = arith.constant 0.000000e+00 : f32
    %136 = vector.broadcast %cst_24 : f32 to vector<2x2xf32>
    %137 = arith.maximumf %135, %136 : vector<2x2xf32>
    %c0_25 = arith.constant 0 : index
    %c0_26 = arith.constant 0 : index
    %138 = vector.load %arg10[%c0_25, %c0_26] : memref<32x2xf32, #tpu.memory_space<vmem>>, vector<32x2xf32>
    %cst_27 = arith.constant dense<0.000000e+00> : vector<32x2xf32>
    %139 = tpu.matmul %138, %137, %cst_27 {dimension_numbers = #tpu.dot_dimension_numbers<[1], [0], [0], [1], [0, 0, 1, 1], [], []>} : vector<32x2xf32>, vector<2x2xf32>, vector<32x2xf32> -> vector<32x2xf32>
    %140 = vector.extract_strided_slice %139 {offsets = [0, 0], sizes = [32, 1], strides = [1, 1]} : vector<32x2xf32> to vector<32x1xf32>
    %141 = vector.extract_strided_slice %139 {offsets = [0, 1], sizes = [32, 1], strides = [1, 1]} : vector<32x2xf32> to vector<32x1xf32>
    %142 = arith.addf %140, %141 : vector<32x1xf32>
    %143 = arith.negf %142 : vector<32x1xf32>
    %144 = math.exp %143 : vector<32x1xf32>
    %cst_28 = arith.constant 1.000000e+00 : f32
    %145 = vector.broadcast %cst_28 : f32 to vector<32x1xf32>
    %146 = arith.addf %145, %144 : vector<32x1xf32>
    %147 = arith.divf %145, %146 : vector<32x1xf32>
    %148 = vector.broadcast %147 : vector<32x1xf32> to vector<32x256xf32>
    %149 = arith.mulf %126, %148 : vector<32x256xf32>
    %cst_29 = arith.constant dense<0.000000e+00> : vector<256xf32>
    %150 = vector.multi_reduction <add>, %149, %cst_29 [0] : vector<32x256xf32> to vector<256xf32>
    %151 = vector.shape_cast %150 : vector<256xf32> to vector<1x256xf32>
    %cst_30 = arith.constant 3.200000e+01 : f32
    %152 = vector.broadcast %cst_30 : f32 to vector<1x256xf32>
    %153 = arith.divf %151, %152 : vector<1x256xf32>
    %cst_31 = arith.constant dense<0xFF800000> : vector<256xf32>
    %154 = vector.multi_reduction <maximumf>, %149, %cst_31 [0] : vector<32x256xf32> to vector<256xf32>
    %155 = vector.shape_cast %154 : vector<256xf32> to vector<1x256xf32>
    %cst_32 = arith.constant 0.000000e+00 : f32
    %156 = vector.broadcast %cst_32 : f32 to vector<1x256xf32>
    %c0_33 = arith.constant 0 : index
    %157 = memref.load %arg11[%c0_33] : memref<18xf32, #tpu.memory_space<smem>>
    %158 = vector.extract_strided_slice %153 {offsets = [0, 239], sizes = [1, 17], strides = [1, 1]} : vector<1x256xf32> to vector<1x17xf32>
    %159 = vector.extract_strided_slice %153 {offsets = [0, 0], sizes = [1, 239], strides = [1, 1]} : vector<1x256xf32> to vector<1x239xf32>
    %160 = tpu.concatenate %158, %159 in 1 : vector<1x17xf32>, vector<1x239xf32> -> vector<1x256xf32>
    %161 = vector.extract_strided_slice %0 {offsets = [0, 0], sizes = [1, 256], strides = [1, 1]} : vector<9x256xf32> to vector<1x256xf32>
    %162 = arith.mulf %160, %161 : vector<1x256xf32>
    %163 = vector.broadcast %157 : f32 to vector<1x256xf32>
    %164 = arith.mulf %163, %162 : vector<1x256xf32>
    %165 = arith.addf %156, %164 : vector<1x256xf32>
    %c9 = arith.constant 9 : index
    %166 = memref.load %arg11[%c9] : memref<18xf32, #tpu.memory_space<smem>>
    %167 = vector.extract_strided_slice %155 {offsets = [0, 239], sizes = [1, 17], strides = [1, 1]} : vector<1x256xf32> to vector<1x17xf32>
    %168 = vector.extract_strided_slice %155 {offsets = [0, 0], sizes = [1, 239], strides = [1, 1]} : vector<1x256xf32> to vector<1x239xf32>
    %169 = tpu.concatenate %167, %168 in 1 : vector<1x17xf32>, vector<1x239xf32> -> vector<1x256xf32>
    %170 = vector.extract_strided_slice %0 {offsets = [0, 0], sizes = [1, 256], strides = [1, 1]} : vector<9x256xf32> to vector<1x256xf32>
    %171 = arith.mulf %169, %170 : vector<1x256xf32>
    %172 = vector.broadcast %166 : f32 to vector<1x256xf32>
    %173 = arith.mulf %172, %171 : vector<1x256xf32>
    %174 = arith.addf %165, %173 : vector<1x256xf32>
    %c1 = arith.constant 1 : index
    %175 = memref.load %arg11[%c1] : memref<18xf32, #tpu.memory_space<smem>>
    %176 = vector.extract_strided_slice %153 {offsets = [0, 240], sizes = [1, 16], strides = [1, 1]} : vector<1x256xf32> to vector<1x16xf32>
    %177 = vector.extract_strided_slice %153 {offsets = [0, 0], sizes = [1, 240], strides = [1, 1]} : vector<1x256xf32> to vector<1x240xf32>
    %178 = tpu.concatenate %176, %177 in 1 : vector<1x16xf32>, vector<1x240xf32> -> vector<1x256xf32>
    %179 = vector.extract_strided_slice %0 {offsets = [1, 0], sizes = [1, 256], strides = [1, 1]} : vector<9x256xf32> to vector<1x256xf32>
    %180 = arith.mulf %178, %179 : vector<1x256xf32>
    %181 = vector.broadcast %175 : f32 to vector<1x256xf32>
    %182 = arith.mulf %181, %180 : vector<1x256xf32>
    %183 = arith.addf %174, %182 : vector<1x256xf32>
    %c10 = arith.constant 10 : index
    %184 = memref.load %arg11[%c10] : memref<18xf32, #tpu.memory_space<smem>>
    %185 = vector.extract_strided_slice %155 {offsets = [0, 240], sizes = [1, 16], strides = [1, 1]} : vector<1x256xf32> to vector<1x16xf32>
    %186 = vector.extract_strided_slice %155 {offsets = [0, 0], sizes = [1, 240], strides = [1, 1]} : vector<1x256xf32> to vector<1x240xf32>
    %187 = tpu.concatenate %185, %186 in 1 : vector<1x16xf32>, vector<1x240xf32> -> vector<1x256xf32>
    %188 = vector.extract_strided_slice %0 {offsets = [1, 0], sizes = [1, 256], strides = [1, 1]} : vector<9x256xf32> to vector<1x256xf32>
    %189 = arith.mulf %187, %188 : vector<1x256xf32>
    %190 = vector.broadcast %184 : f32 to vector<1x256xf32>
    %191 = arith.mulf %190, %189 : vector<1x256xf32>
    %192 = arith.addf %183, %191 : vector<1x256xf32>
    %c2 = arith.constant 2 : index
    %193 = memref.load %arg11[%c2] : memref<18xf32, #tpu.memory_space<smem>>
    %194 = vector.extract_strided_slice %153 {offsets = [0, 241], sizes = [1, 15], strides = [1, 1]} : vector<1x256xf32> to vector<1x15xf32>
    %195 = vector.extract_strided_slice %153 {offsets = [0, 0], sizes = [1, 241], strides = [1, 1]} : vector<1x256xf32> to vector<1x241xf32>
    %196 = tpu.concatenate %194, %195 in 1 : vector<1x15xf32>, vector<1x241xf32> -> vector<1x256xf32>
    %197 = vector.extract_strided_slice %0 {offsets = [2, 0], sizes = [1, 256], strides = [1, 1]} : vector<9x256xf32> to vector<1x256xf32>
    %198 = arith.mulf %196, %197 : vector<1x256xf32>
    %199 = vector.broadcast %193 : f32 to vector<1x256xf32>
    %200 = arith.mulf %199, %198 : vector<1x256xf32>
    %201 = arith.addf %192, %200 : vector<1x256xf32>
    %c11 = arith.constant 11 : index
    %202 = memref.load %arg11[%c11] : memref<18xf32, #tpu.memory_space<smem>>
    %203 = vector.extract_strided_slice %155 {offsets = [0, 241], sizes = [1, 15], strides = [1, 1]} : vector<1x256xf32> to vector<1x15xf32>
    %204 = vector.extract_strided_slice %155 {offsets = [0, 0], sizes = [1, 241], strides = [1, 1]} : vector<1x256xf32> to vector<1x241xf32>
    %205 = tpu.concatenate %203, %204 in 1 : vector<1x15xf32>, vector<1x241xf32> -> vector<1x256xf32>
    %206 = vector.extract_strided_slice %0 {offsets = [2, 0], sizes = [1, 256], strides = [1, 1]} : vector<9x256xf32> to vector<1x256xf32>
    %207 = arith.mulf %205, %206 : vector<1x256xf32>
    %208 = vector.broadcast %202 : f32 to vector<1x256xf32>
    %209 = arith.mulf %208, %207 : vector<1x256xf32>
    %210 = arith.addf %201, %209 : vector<1x256xf32>
    %c3 = arith.constant 3 : index
    %211 = memref.load %arg11[%c3] : memref<18xf32, #tpu.memory_space<smem>>
    %212 = vector.extract_strided_slice %153 {offsets = [0, 255], sizes = [1, 1], strides = [1, 1]} : vector<1x256xf32> to vector<1x1xf32>
    %213 = vector.extract_strided_slice %153 {offsets = [0, 0], sizes = [1, 255], strides = [1, 1]} : vector<1x256xf32> to vector<1x255xf32>
    %214 = tpu.concatenate %212, %213 in 1 : vector<1x1xf32>, vector<1x255xf32> -> vector<1x256xf32>
    %215 = vector.extract_strided_slice %0 {offsets = [3, 0], sizes = [1, 256], strides = [1, 1]} : vector<9x256xf32> to vector<1x256xf32>
    %216 = arith.mulf %214, %215 : vector<1x256xf32>
    %217 = vector.broadcast %211 : f32 to vector<1x256xf32>
    %218 = arith.mulf %217, %216 : vector<1x256xf32>
    %219 = arith.addf %210, %218 : vector<1x256xf32>
    %c12 = arith.constant 12 : index
    %220 = memref.load %arg11[%c12] : memref<18xf32, #tpu.memory_space<smem>>
    %221 = vector.extract_strided_slice %155 {offsets = [0, 255], sizes = [1, 1], strides = [1, 1]} : vector<1x256xf32> to vector<1x1xf32>
    %222 = vector.extract_strided_slice %155 {offsets = [0, 0], sizes = [1, 255], strides = [1, 1]} : vector<1x256xf32> to vector<1x255xf32>
    %223 = tpu.concatenate %221, %222 in 1 : vector<1x1xf32>, vector<1x255xf32> -> vector<1x256xf32>
    %224 = vector.extract_strided_slice %0 {offsets = [3, 0], sizes = [1, 256], strides = [1, 1]} : vector<9x256xf32> to vector<1x256xf32>
    %225 = arith.mulf %223, %224 : vector<1x256xf32>
    %226 = vector.broadcast %220 : f32 to vector<1x256xf32>
    %227 = arith.mulf %226, %225 : vector<1x256xf32>
    %228 = arith.addf %219, %227 : vector<1x256xf32>
    %c4 = arith.constant 4 : index
    %229 = memref.load %arg11[%c4] : memref<18xf32, #tpu.memory_space<smem>>
    %230 = vector.extract_strided_slice %0 {offsets = [4, 0], sizes = [1, 256], strides = [1, 1]} : vector<9x256xf32> to vector<1x256xf32>
    %231 = arith.mulf %153, %230 : vector<1x256xf32>
    %232 = vector.broadcast %229 : f32 to vector<1x256xf32>
    %233 = arith.mulf %232, %231 : vector<1x256xf32>
    %234 = arith.addf %228, %233 : vector<1x256xf32>
    %c13 = arith.constant 13 : index
    %235 = memref.load %arg11[%c13] : memref<18xf32, #tpu.memory_space<smem>>
    %236 = vector.extract_strided_slice %0 {offsets = [4, 0], sizes = [1, 256], strides = [1, 1]} : vector<9x256xf32> to vector<1x256xf32>
    %237 = arith.mulf %155, %236 : vector<1x256xf32>
    %238 = vector.broadcast %235 : f32 to vector<1x256xf32>
    %239 = arith.mulf %238, %237 : vector<1x256xf32>
    %240 = arith.addf %234, %239 : vector<1x256xf32>
    %c5 = arith.constant 5 : index
    %241 = memref.load %arg11[%c5] : memref<18xf32, #tpu.memory_space<smem>>
    %242 = vector.extract_strided_slice %153 {offsets = [0, 1], sizes = [1, 255], strides = [1, 1]} : vector<1x256xf32> to vector<1x255xf32>
    %243 = vector.extract_strided_slice %153 {offsets = [0, 0], sizes = [1, 1], strides = [1, 1]} : vector<1x256xf32> to vector<1x1xf32>
    %244 = tpu.concatenate %242, %243 in 1 : vector<1x255xf32>, vector<1x1xf32> -> vector<1x256xf32>
    %245 = vector.extract_strided_slice %0 {offsets = [5, 0], sizes = [1, 256], strides = [1, 1]} : vector<9x256xf32> to vector<1x256xf32>
    %246 = arith.mulf %244, %245 : vector<1x256xf32>
    %247 = vector.broadcast %241 : f32 to vector<1x256xf32>
    %248 = arith.mulf %247, %246 : vector<1x256xf32>
    %249 = arith.addf %240, %248 : vector<1x256xf32>
    %c14 = arith.constant 14 : index
    %250 = memref.load %arg11[%c14] : memref<18xf32, #tpu.memory_space<smem>>
    %251 = vector.extract_strided_slice %155 {offsets = [0, 1], sizes = [1, 255], strides = [1, 1]} : vector<1x256xf32> to vector<1x255xf32>
    %252 = vector.extract_strided_slice %155 {offsets = [0, 0], sizes = [1, 1], strides = [1, 1]} : vector<1x256xf32> to vector<1x1xf32>
    %253 = tpu.concatenate %251, %252 in 1 : vector<1x255xf32>, vector<1x1xf32> -> vector<1x256xf32>
    %254 = vector.extract_strided_slice %0 {offsets = [5, 0], sizes = [1, 256], strides = [1, 1]} : vector<9x256xf32> to vector<1x256xf32>
    %255 = arith.mulf %253, %254 : vector<1x256xf32>
    %256 = vector.broadcast %250 : f32 to vector<1x256xf32>
    %257 = arith.mulf %256, %255 : vector<1x256xf32>
    %258 = arith.addf %249, %257 : vector<1x256xf32>
    %c6 = arith.constant 6 : index
    %259 = memref.load %arg11[%c6] : memref<18xf32, #tpu.memory_space<smem>>
    %260 = vector.extract_strided_slice %153 {offsets = [0, 15], sizes = [1, 241], strides = [1, 1]} : vector<1x256xf32> to vector<1x241xf32>
    %261 = vector.extract_strided_slice %153 {offsets = [0, 0], sizes = [1, 15], strides = [1, 1]} : vector<1x256xf32> to vector<1x15xf32>
    %262 = tpu.concatenate %260, %261 in 1 : vector<1x241xf32>, vector<1x15xf32> -> vector<1x256xf32>
    %263 = vector.extract_strided_slice %0 {offsets = [6, 0], sizes = [1, 256], strides = [1, 1]} : vector<9x256xf32> to vector<1x256xf32>
    %264 = arith.mulf %262, %263 : vector<1x256xf32>
    %265 = vector.broadcast %259 : f32 to vector<1x256xf32>
    %266 = arith.mulf %265, %264 : vector<1x256xf32>
    %267 = arith.addf %258, %266 : vector<1x256xf32>
    %c15 = arith.constant 15 : index
    %268 = memref.load %arg11[%c15] : memref<18xf32, #tpu.memory_space<smem>>
    %269 = vector.extract_strided_slice %155 {offsets = [0, 15], sizes = [1, 241], strides = [1, 1]} : vector<1x256xf32> to vector<1x241xf32>
    %270 = vector.extract_strided_slice %155 {offsets = [0, 0], sizes = [1, 15], strides = [1, 1]} : vector<1x256xf32> to vector<1x15xf32>
    %271 = tpu.concatenate %269, %270 in 1 : vector<1x241xf32>, vector<1x15xf32> -> vector<1x256xf32>
    %272 = vector.extract_strided_slice %0 {offsets = [6, 0], sizes = [1, 256], strides = [1, 1]} : vector<9x256xf32> to vector<1x256xf32>
    %273 = arith.mulf %271, %272 : vector<1x256xf32>
    %274 = vector.broadcast %268 : f32 to vector<1x256xf32>
    %275 = arith.mulf %274, %273 : vector<1x256xf32>
    %276 = arith.addf %267, %275 : vector<1x256xf32>
    %c7 = arith.constant 7 : index
    %277 = memref.load %arg11[%c7] : memref<18xf32, #tpu.memory_space<smem>>
    %278 = vector.extract_strided_slice %153 {offsets = [0, 16], sizes = [1, 240], strides = [1, 1]} : vector<1x256xf32> to vector<1x240xf32>
    %279 = vector.extract_strided_slice %153 {offsets = [0, 0], sizes = [1, 16], strides = [1, 1]} : vector<1x256xf32> to vector<1x16xf32>
    %280 = tpu.concatenate %278, %279 in 1 : vector<1x240xf32>, vector<1x16xf32> -> vector<1x256xf32>
    %281 = vector.extract_strided_slice %0 {offsets = [7, 0], sizes = [1, 256], strides = [1, 1]} : vector<9x256xf32> to vector<1x256xf32>
    %282 = arith.mulf %280, %281 : vector<1x256xf32>
    %283 = vector.broadcast %277 : f32 to vector<1x256xf32>
    %284 = arith.mulf %283, %282 : vector<1x256xf32>
    %285 = arith.addf %276, %284 : vector<1x256xf32>
    %c16 = arith.constant 16 : index
    %286 = memref.load %arg11[%c16] : memref<18xf32, #tpu.memory_space<smem>>
    %287 = vector.extract_strided_slice %155 {offsets = [0, 16], sizes = [1, 240], strides = [1, 1]} : vector<1x256xf32> to vector<1x240xf32>
    %288 = vector.extract_strided_slice %155 {offsets = [0, 0], sizes = [1, 16], strides = [1, 1]} : vector<1x256xf32> to vector<1x16xf32>
    %289 = tpu.concatenate %287, %288 in 1 : vector<1x240xf32>, vector<1x16xf32> -> vector<1x256xf32>
    %290 = vector.extract_strided_slice %0 {offsets = [7, 0], sizes = [1, 256], strides = [1, 1]} : vector<9x256xf32> to vector<1x256xf32>
    %291 = arith.mulf %289, %290 : vector<1x256xf32>
    %292 = vector.broadcast %286 : f32 to vector<1x256xf32>
    %293 = arith.mulf %292, %291 : vector<1x256xf32>
    %294 = arith.addf %285, %293 : vector<1x256xf32>
    %c8 = arith.constant 8 : index
    %295 = memref.load %arg11[%c8] : memref<18xf32, #tpu.memory_space<smem>>
    %296 = vector.extract_strided_slice %153 {offsets = [0, 17], sizes = [1, 239], strides = [1, 1]} : vector<1x256xf32> to vector<1x239xf32>
    %297 = vector.extract_strided_slice %153 {offsets = [0, 0], sizes = [1, 17], strides = [1, 1]} : vector<1x256xf32> to vector<1x17xf32>
    %298 = tpu.concatenate %296, %297 in 1 : vector<1x239xf32>, vector<1x17xf32> -> vector<1x256xf32>
    %299 = vector.extract_strided_slice %0 {offsets = [8, 0], sizes = [1, 256], strides = [1, 1]} : vector<9x256xf32> to vector<1x256xf32>
    %300 = arith.mulf %298, %299 : vector<1x256xf32>
    %301 = vector.broadcast %295 : f32 to vector<1x256xf32>
    %302 = arith.mulf %301, %300 : vector<1x256xf32>
    %303 = arith.addf %294, %302 : vector<1x256xf32>
    %c17 = arith.constant 17 : index
    %304 = memref.load %arg11[%c17] : memref<18xf32, #tpu.memory_space<smem>>
    %305 = vector.extract_strided_slice %155 {offsets = [0, 17], sizes = [1, 239], strides = [1, 1]} : vector<1x256xf32> to vector<1x239xf32>
    %306 = vector.extract_strided_slice %155 {offsets = [0, 0], sizes = [1, 17], strides = [1, 1]} : vector<1x256xf32> to vector<1x17xf32>
    %307 = tpu.concatenate %305, %306 in 1 : vector<1x239xf32>, vector<1x17xf32> -> vector<1x256xf32>
    %308 = vector.extract_strided_slice %0 {offsets = [8, 0], sizes = [1, 256], strides = [1, 1]} : vector<9x256xf32> to vector<1x256xf32>
    %309 = arith.mulf %307, %308 : vector<1x256xf32>
    %310 = vector.broadcast %304 : f32 to vector<1x256xf32>
    %311 = arith.mulf %310, %309 : vector<1x256xf32>
    %312 = arith.addf %303, %311 : vector<1x256xf32>
    %313 = arith.negf %312 : vector<1x256xf32>
    %314 = math.exp %313 : vector<1x256xf32>
    %cst_34 = arith.constant 1.000000e+00 : f32
    %315 = vector.broadcast %cst_34 : f32 to vector<1x256xf32>
    %316 = arith.addf %315, %314 : vector<1x256xf32>
    %317 = arith.divf %315, %316 : vector<1x256xf32>
    %318 = vector.broadcast %317 : vector<1x256xf32> to vector<32x256xf32>
    %319 = arith.mulf %149, %318 : vector<32x256xf32>
    %320 = arith.addf %319, %2 : vector<32x256xf32>
    %cst_35 = arith.constant 0.000000e+00 : f32
    %321 = vector.broadcast %cst_35 : f32 to vector<32x256xf32>
    %322 = arith.maximumf %320, %321 : vector<32x256xf32>
    %c0_36 = arith.constant 0 : index
    %c0_37 = arith.constant 0 : index
    %c0_38 = arith.constant 0 : index
    %323 = vector.load %arg12[%c0_36, %c0_37, %c0_38] : memref<1x32x256xf32, #tpu.memory_space<vmem>>, vector<1x32x256xf32>
    %324 = vector.shape_cast %323 : vector<1x32x256xf32> to vector<32x256xf32>
    %325 = vector.shape_cast %322 : vector<32x256xf32> to vector<1x32x256xf32>
    tpu.vector_store %arg12[%c0_36, %c0_37, %c0_38], %325 {strides = array<i32>} : memref<1x32x256xf32, #tpu.memory_space<vmem>>, vector<1x32x256xf32>,
    return
  }
  func.func @transform_0(%arg0: i32) -> (i32, i32, i32) {
    %c0_i32 = arith.constant 0 : i32
    %c0_i32_0 = arith.constant 0 : i32
    %c0_i32_1 = arith.constant 0 : i32
    return %arg0, %c0_i32, %c0_i32_0 : i32, i32, i32
  }
  func.func @transform_1(%arg0: i32) -> (i32, i32) {
    %c0_i32 = arith.constant 0 : i32
    %c0_i32_0 = arith.constant 0 : i32
    %c0_i32_1 = arith.constant 0 : i32
    return %c0_i32, %c0_i32_0 : i32, i32
  }
  func.func @transform_2(%arg0: i32) -> (i32, i32) {
    %c0_i32 = arith.constant 0 : i32
    %c0_i32_0 = arith.constant 0 : i32
    %c0_i32_1 = arith.constant 0 : i32
    return %c0_i32, %c0_i32_0 : i32, i32
  }
  func.func @transform_3(%arg0: i32) -> (i32, i32) {
    %c0_i32 = arith.constant 0 : i32
    %c0_i32_0 = arith.constant 0 : i32
    %c0_i32_1 = arith.constant 0 : i32
    return %c0_i32, %c0_i32_0 : i32, i32
  }
  func.func @transform_4(%arg0: i32) -> (i32, i32) {
    %c0_i32 = arith.constant 0 : i32
    %c0_i32_0 = arith.constant 0 : i32
    %c0_i32_1 = arith.constant 0 : i32
    return %c0_i32, %c0_i32_0 : i32, i32
  }
  func.func @transform_5(%arg0: i32) -> (i32, i32) {
    %c0_i32 = arith.constant 0 : i32
    %c0_i32_0 = arith.constant 0 : i32
    %c0_i32_1 = arith.constant 0 : i32
    return %c0_i32, %c0_i32_0 : i32, i32
  }
  func.func @transform_6(%arg0: i32) -> (i32, i32) {
    %c0_i32 = arith.constant 0 : i32
    %c0_i32_0 = arith.constant 0 : i32
    %c0_i32_1 = arith.constant 0 : i32
    return %c0_i32, %c0_i32_0 : i32, i32
  }
  func.func @transform_7(%arg0: i32) -> (i32, i32) {
    %c0_i32 = arith.constant 0 : i32
    %c0_i32_0 = arith.constant 0 : i32
    %c0_i32_1 = arith.constant 0 : i32
    return %c0_i32, %c0_i32_0 : i32, i32
  }
  func.func @transform_8(%arg0: i32) -> (i32, i32) {
    %c0_i32 = arith.constant 0 : i32
    %c0_i32_0 = arith.constant 0 : i32
    %c0_i32_1 = arith.constant 0 : i32
    return %c0_i32, %c0_i32_0 : i32, i32
  }
  func.func @transform_9(%arg0: i32) -> (i32, i32) {
    %c0_i32 = arith.constant 0 : i32
    %c0_i32_0 = arith.constant 0 : i32
    %c0_i32_1 = arith.constant 0 : i32
    return %c0_i32, %c0_i32_0 : i32, i32
  }
  func.func @transform_10(%arg0: i32) -> i32 {
    %c0_i32 = arith.constant 0 : i32
    %c0_i32_0 = arith.constant 0 : i32
    return %c0_i32 : i32
  }
  func.func @transform_11(%arg0: i32) -> (i32, i32, i32) {
    %c0_i32 = arith.constant 0 : i32
    %c0_i32_0 = arith.constant 0 : i32
    %c0_i32_1 = arith.constant 0 : i32
    return %arg0, %c0_i32, %c0_i32_0 : i32, i32, i32
  }
}

</mosaic_0001>

<bundles_post_ra>
// kernel: basic_block_forward.1
= control target key start
LH: loop header
LB: loop body
LE: loop exit
PB: predicated region body
PF: predicated region fallthrough
CT: control target
= control target key end

     0   :  { %16 = vsyncpa [#allocation3], 0  ;;  %s2811_s17 = smov 0   ;;  %s4047_s0 = inlined_call_operand.vmem [shape: f32[2,32,256], index: 0, kind: input, shape index: {}]   ;;  %s4048_s1 = inlined_call_operand.vmem [shape: f32[9,256], index: 1, kind: input, shape index: {}]   ;;  %s4049_s2 = inlined_call_operand.vmem [shape: bf16[32,288], index: 2, kind: input, shape index: {}]   ;;  %s4050_s3 = inlined_call_operand.vmem [shape: f32[32,1], index: 3, kind: input, shape index: {}]   ;;  %s4051_s4 = inlined_call_operand.vmem [shape: f32[32,1], index: 4, kind: input, shape index: {}]   ;;  %s4052_s5 = inlined_call_operand.vmem [shape: bf16[32,288], index: 5, kind: input, shape index: {}]   ;;  %s4053_s6 = inlined_call_operand.vmem [shape: f32[32,1], index: 6, kind: input, shape index: {}]   ;;  %s4054_s7 = inlined_call_operand.vmem [shape: f32[32,1], index: 7, kind: input, shape index: {}]   ;;  %s4055_s8 = inlined_call_operand.vmem [shape: f32[2,32], index: 8, kind: input, shape index: {}]   ;;  %s4056_s9 = inlined_call_operand.vmem [shape: f32[32,2], index: 9, kind: input, shape index: {}]   ;;  %s4057_s10 = inlined_call_operand.vmem [shape: f32[18], index: 10, kind: input, shape index: {}]   ;;  %s4058_s11 = inlined_call_operand.vmem [shape: f32[2,32,256], index: 11, kind: output, shape index: {}]  }
   0x1 LB: > { %s2513_s18 = sadd.s32 4294967295, %s2736_s17   ;;  %p2515_p0 = scmp.ge.s32.totalorder %s2736_s17, 1  ;;  %s2736_s17 = sphi %s2811_s17, %s22_s17  }
   0x2   : > { %p289_p1 = scmp.lt.s32.totalorder %s2736_s17, 3  ;;  %s329_s21 = sshll.u32 %s4057_s10, 4  ;;  %s330_s21 = int_to_ptr.vmem [resolvable:$true] %s329_s21 }
   0x3   : > { %p2632_p3 = scmp.eq.s32.totalorder %s2513_s18, 0  ;;  %s2711_s23 = scalar_lea.vmem %s330_s21, 16 }
   0x4   : > { %p2822_p2 = pnand %p2515_p0, %p289_p1  ;;  %p2712_p6 = scmp.ne.s32.totalorder %s330_s21, %s2711_s23 }
   0x5   : > { %p2719_p10 = scmp.lt.s32.totalorder %s330_s21, %s330_s21  ;;  %p2720_p11 = scmp.lt.s32.totalorder %s2711_s23, %s2711_s23 }
   0x6   : > { %p2628_p4 = pneg %p2822_p2 }
   0x7   : > { %p2721_p12 = por %p2720_p11, %p2719_p10 }
   0x8   : > { %p2629_p5 = pnand %p2632_p3, %p2628_p4 }
   0xa   : > { %p2713_p7 = pneg %p2629_p5 }
   0xc   : > { %p2714_p8 = pnand %p2713_p7, %p2712_p6 }
   0xe   : > { %p2715_p9 = pneg %p2714_p8 }
  0x10   : > { %p2722_p13 = pnand %p2721_p12, %p2715_p9 }
  0x12   : > { %2725 = shalt.err (!%p2722_p13)
}
  0x13   : > { %s2738_s24 = smov [#allocation2]   ;;  %350 = sbr.rel (%p2822_p2) target bundleno = 2074 (0x81a), region = 64 }
  0x14   : > { %2631 = dma.vmem_to_smem (!%p2629_p5), %s330_s21, 16, %s2738_s24, [#allocation3]  }
  0x1a   : > { %2731 = dma.done.wait (%p2632_p3), [#allocation3], 16  }
  0x1b   : > { %2733 = vsyncadd (%p2632_p3), [#allocation3], 4294967280 }
  0x1c   : > { %356 = sfence }
  0x1d   : > { %p391_p0 = scmp.lt.s32.totalorder %s2513_s18, 1  ;;  %s2739_s29 = smov 17   ;;  %v2659_v8 = vld [vmem:[%s4049_s2 + $0x4] ss:$12 sps:$4 sm:$0xff]   ;;  %v459_v9 = vlaneseq  ;;  %v2994_v12 = vld [vmem:[%s4048_s1 + $0x8] sm:$0xff]  ;;  %vm442_vm0 = vcmask 138240  }
  0x1e   : > { %s2740_s30 = smov 16   ;;  %s2741_s12 = smov 15   ;;  %975 = vmatprep.mubr.bf16.mxu0 %v2659_v8  ;;  %v2999_v13 = vld [vmem:[%s4048_s1] sm:$0xff]  ;;  %v2747_v22 = vmov 0   ;;  %v1050_v44 = vld [vmem:[%s4050_s3 + $0x8] sm:$0xff]  ;;  %vm495_vm1 = vcmask 130048  }
  0x1f   : > { %s4063_s18 = smov (!%p391_p0, %s2513_s18), 1  ;;  %s2742_s13 = smov 1   ;;  %v2978_v10 = vshrl.u32 %v459_v9, 7  ;;  %2656 = vset.pattern.permute.xlu1 %v2747_v22  ;;  %2655 = vset.pattern.permute.xlu0 %v2747_v22  ;;  %v1049_v45 = vld [vmem:[%s4050_s3] sm:$0xff]  ;;  %v1082_v51 = vld [vmem:[%s4051_s4 + $0x8] sm:$0xff]  ;;  %v1051_v56 = vld [vmem:[%s4050_s3 + $0x10] sm:$0xff] }
  0x20   : > { %s4059_s25 = sshll.u32 %s4063_s18, 6  ;;  %s2743_s14 = smov 127   ;;  %v1081_v50 = vld [vmem:[%s4051_s4] sm:$0xff]  ;;  %v1052_v61 = vld [vmem:[%s4050_s3 + $0x18] sm:$0xff]  ;;  %vm548_vm2 = vcmask 121856   ;;  %vm601_vm3 = vcmask 7168  }
  0x21   : > { %s2841_s28 = scalar_lea.vmem %s4047_s0, %s4059_s25  ;;  %s2744_s15 = smov 113   ;;  %v2985_v11 = vsub.s32 0, %v2978_v10  ;;  %v514_v35 = vsub.s32 1, %v2978_v10  ;;  %vm666_vm4 = vcmask 1039360   ;;  %vm719_vm5 = vcmask 924672  }
  0x22   : > { %v2844_v0 = vld [vmem:[%s2841_s28 + $0x8] sm:$0xff]  ;;  %v2847_v1 = vld [vmem:[%s2841_s28] sm:$0xff]  ;;  %v2854_v2 = vld [vmem:[%s2841_s28 + $0x18] sm:$0xff]  ;;  %s2745_s16 = smov 112   ;;  %s2746_s21 = smov 111   ;;  %vm772_vm6 = vcmask 916480  }
  0x23   : > { %418 = vrot.lane.b32.xlu0 %v2844_v0, %s2739_s29  ;;  %434 = vrot.lane.b32.xlu1 %v2847_v1, %s2739_s29  ;;  %v2857_v3 = vld [vmem:[%s2841_s28 + $0x10] sm:$0xff]  ;;  %v2864_v4 = vld [vmem:[%s2841_s28 + $0x28] sm:$0xff]  ;;  %v3003_v16 = vrot.slane %v2994_v12, %v2985_v11  ;;  %v3012_v18 = vrot.slane %v2999_v13, %v2985_v11  ;;  %v3053_v52 = vrot.slane %v2999_v13, %v514_v35  ;;  %vm825_vm7 = vcmask 908288   ;;  %s3872_s27 = sld [smem:[#allocation2 + $0x1]]  ;;  %s3874_s19 = sld [smem:[#allocation2 + $0x2]] }
  0x24   : > { %v2867_v5 = vld [vmem:[%s2841_s28 + $0x38] sm:$0xff]  ;;  %v2874_v6 = vld [vmem:[%s2841_s28 + $0x20] sm:$0xff]  ;;  %v2877_v7 = vld [vmem:[%s2841_s28 + $0x30] sm:$0xff]  ;;  %v3056_v53 = vrot.slane %v2994_v12, %v514_v35  ;;  %vm936_vm8 = vcmask 261120   ;;  %vm2749_vm9 = vmmov 0   ;;  %vm1851_vm10 = vcmask 15360  }
  0x25   : > { %vm1864_vm11 = vcmask 1041408   ;;  %s3904_s25 = sld [smem:[#allocation2 + $0x3]]  ;;  %s3923_s20 = sld [smem:[#allocation2 + $0xf]] }
  0x26   : > { %s4061_s24 = sshll.u32 %s4063_s18, 6 }
  0x27   : > { %420 = vrot.lane.b32.xlu0 %v2854_v2, %s2739_s29  ;;  %436 = vrot.lane.b32.xlu1 %v2857_v3, %s2739_s29 }
  0x2b   : > { %422 = vrot.lane.b32.xlu0 %v2864_v4, %s2739_s29  ;;  %424 = vrot.lane.b32.xlu1 %v2867_v5, %s2739_s29 }
  0x2f   : > { %438 = vrot.lane.b32.xlu0 %v2874_v6, %s2739_s29  ;;  %440 = vrot.lane.b32.xlu1 %v2877_v7, %s2739_s29 }
  0x33   : > { %475 = vrot.lane.b32.xlu0 %v2844_v0, %s2740_s30  ;;  %477 = vrot.lane.b32.xlu1 %v2854_v2, %s2740_s30 }
  0x37   : > { %487 = vrot.lane.b32.xlu0 %v2847_v1, %s2740_s30  ;;  %489 = vrot.lane.b32.xlu1 %v2857_v3, %s2740_s30 }
  0x3b   : > { %479 = vrot.lane.b32.xlu0 %v2864_v4, %s2740_s30  ;;  %481 = vrot.lane.b32.xlu1 %v2867_v5, %s2740_s30 }
  0x3f   : > { %491 = vrot.lane.b32.xlu0 %v2874_v6, %s2740_s30  ;;  %493 = vrot.lane.b32.xlu1 %v2877_v7, %s2740_s30 }
  0x43   : > { %528 = vrot.lane.b32.xlu0 %v2844_v0, %s2741_s12  ;;  %530 = vrot.lane.b32.xlu1 %v2854_v2, %s2741_s12 }
  0x47   : > { %540 = vrot.lane.b32.xlu0 %v2847_v1, %s2741_s12  ;;  %542 = vrot.lane.b32.xlu1 %v2857_v3, %s2741_s12 }
  0x4b   : > { %532 = vrot.lane.b32.xlu0 %v2864_v4, %s2741_s12  ;;  %534 = vrot.lane.b32.xlu1 %v2867_v5, %s2741_s12 }
  0x4f   : > { %544 = vrot.lane.b32.xlu0 %v2874_v6, %s2741_s12  ;;  %546 = vrot.lane.b32.xlu1 %v2877_v7, %s2741_s12 }
  0x53   : > { %581 = vrot.lane.b32.xlu0 %v2844_v0, %s2742_s13  ;;  %583 = vrot.lane.b32.xlu1 %v2854_v2, %s2742_s13 }
  0x57   : > { %593 = vrot.lane.b32.xlu0 %v2847_v1, %s2742_s13  ;;  %595 = vrot.lane.b32.xlu1 %v2857_v3, %s2742_s13 }
  0x5b   : > { %585 = vrot.lane.b32.xlu0 %v2864_v4, %s2742_s13  ;;  %587 = vrot.lane.b32.xlu1 %v2867_v5, %s2742_s13 }
  0x5f   : > { %597 = vrot.lane.b32.xlu0 %v2874_v6, %s2742_s13  ;;  %599 = vrot.lane.b32.xlu1 %v2877_v7, %s2742_s13 }
  0x63   : > { %650 = vrot.lane.b32.xlu0 %v2847_v1, %s2743_s14  ;;  %652 = vrot.lane.b32.xlu1 %v2844_v0, %s2743_s14 }
  0x67   : > { %654 = vrot.lane.b32.xlu0 %v2857_v3, %s2743_s14  ;;  %656 = vrot.lane.b32.xlu1 %v2854_v2, %s2743_s14 }
  0x6b   : > { %658 = vrot.lane.b32.xlu0 %v2874_v6, %s2743_s14  ;;  %660 = vrot.lane.b32.xlu1 %v2864_v4, %s2743_s14 }
  0x6f   : > { %662 = vrot.lane.b32.xlu0 %v2877_v7, %s2743_s14  ;;  %664 = vrot.lane.b32.xlu1 %v2867_v5, %s2743_s14 }
  0x73   : > { %703 = vrot.lane.b32.xlu0 %v2847_v1, %s2744_s15  ;;  %705 = vrot.lane.b32.xlu1 %v2844_v0, %s2744_s15 }
  0x77   : > { %707 = vrot.lane.b32.xlu0 %v2857_v3, %s2744_s15  ;;  %709 = vrot.lane.b32.xlu1 %v2854_v2, %s2744_s15 }
  0x7b   : > { %711 = vrot.lane.b32.xlu0 %v2874_v6, %s2744_s15  ;;  %713 = vrot.lane.b32.xlu1 %v2864_v4, %s2744_s15 }
  0x7f   : > { %715 = vrot.lane.b32.xlu0 %v2877_v7, %s2744_s15  ;;  %717 = vrot.lane.b32.xlu1 %v2867_v5, %s2744_s15 }
  0x83   : > { %756 = vrot.lane.b32.xlu0 %v2847_v1, %s2745_s16  ;;  %758 = vrot.lane.b32.xlu1 %v2844_v0, %s2745_s16 }
  0x87   : > { %760 = vrot.lane.b32.xlu0 %v2857_v3, %s2745_s16  ;;  %762 = vrot.lane.b32.xlu1 %v2854_v2, %s2745_s16 }
  0x8b   : > { %764 = vrot.lane.b32.xlu0 %v2874_v6, %s2745_s16  ;;  %766 = vrot.lane.b32.xlu1 %v2864_v4, %s2745_s16 }
  0x8f   : > { %768 = vrot.lane.b32.xlu0 %v2877_v7, %s2745_s16  ;;  %770 = vrot.lane.b32.xlu1 %v2867_v5, %s2745_s16 }
  0x93   : > { %809 = vrot.lane.b32.xlu0 %v2847_v1, %s2746_s21  ;;  %811 = vrot.lane.b32.xlu1 %v2844_v0, %s2746_s21 }
  0x95   : > { %v419_v14 = vpop.permute.xlu0 %418  ;;  %v435_v15 = vpop.permute.xlu1 %434 }
  0x96   : > { %v443_v17 = vsel %vm442_vm0, %v435_v15, %v419_v14  ;;  %v455_v19 = vsel %vm442_vm0, %v419_v14, %v435_v15 }
  0x97   : > { %813 = vrot.lane.b32.xlu0 %v2857_v3, %s2746_s21  ;;  %815 = vrot.lane.b32.xlu1 %v2854_v2, %s2746_s21  ;;  %v468_v25 = vmul.f32 %v3003_v16, %v443_v17  ;;  %v467_v27 = vmul.f32 %v3012_v18, %v455_v19 }
  0x99   : > { %v421_v20 = vpop.permute.xlu0 %420  ;;  %v437_v21 = vpop.permute.xlu1 %436 }
  0x9a   : > { %v456_v23 = vsel %vm442_vm0, %v421_v20, %v437_v21  ;;  %v444_v24 = vsel %vm442_vm0, %v437_v21, %v421_v20  ;;  %v1083_v20 = vld [vmem:[%s4051_s4 + $0x10] sm:$0xff]  ;;  %v1084_v21 = vld [vmem:[%s4051_s4 + $0x18] sm:$0xff] }
  0x9b   : > { %817 = vrot.lane.b32.xlu0 %v2874_v6, %s2746_s21  ;;  %819 = vrot.lane.b32.xlu1 %v2864_v4, %s2746_s21  ;;  %v470_v26 = vmul.f32 %v3003_v16, %v444_v24  ;;  %v469_v28 = vmul.f32 %v3012_v18, %v456_v23 }
  0x9d   : > { %v423_v29 = vpop.permute.xlu0 %422  ;;  %v425_v30 = vpop.permute.xlu1 %424  ;;  %v871_v31 = vpack.c.bf16 %v470_v26, %v468_v25  ;;  %v870_v32 = vpack.c.bf16 %v469_v28, %v467_v27  ;;  %v567_v25 = vsub.s32 2, %v2978_v10 }
  0x9f   : > { %821 = vrot.lane.b32.xlu0 %v2877_v7, %s2746_s21  ;;  %823 = vrot.lane.b32.xlu1 %v2867_v5, %s2746_s21 }
  0xa0   : > { %943 = vmatprep.subr.bf16.mxu0 %v871_v31 }
  0xa1   : > { %944 = vmatpush1.bf16.msra.mxu0 %v870_v32  ;;  %v439_v33 = vpop.permute.xlu0 %438  ;;  %v441_v34 = vpop.permute.xlu1 %440 }
  0xa2   : > { %v445_v36 = vsel %vm442_vm0, %v439_v33, %v423_v29  ;;  %v457_v37 = vsel %vm442_vm0, %v423_v29, %v439_v33  ;;  %v446_v38 = vsel %vm442_vm0, %v441_v34, %v425_v30  ;;  %v458_v39 = vsel %vm442_vm0, %v425_v30, %v441_v34 }
  0xa3   : > { %v471_v40 = vmul.f32 %v3012_v18, %v457_v37  ;;  %v472_v41 = vmul.f32 %v3003_v16, %v445_v36  ;;  %v473_v42 = vmul.f32 %v3012_v18, %v458_v39  ;;  %v474_v43 = vmul.f32 %v3003_v16, %v446_v38  ;;  %1060 = vperm.xlu1 %2656, %v1050_v44  }
  0xa4   : > { %1055 = vperm.xlu0 %2655, %v1049_v45   ;;  %v3088_v38 = vrot.slane %v2999_v13, %v567_v25  ;;  %v3091_v39 = vrot.slane %v2994_v12, %v567_v25 }
  0xa5   : > { %v476_v46 = vpop.permute.xlu0 %475  ;;  %v478_v47 = vpop.permute.xlu1 %477  ;;  %v873_v48 = vpack.c.bf16 %v474_v43, %v472_v41  ;;  %v872_v49 = vpack.c.bf16 %v473_v42, %v471_v40 }
  0xa7   : > { %945 = vmatprep.subr.bf16.mxu0 %v873_v48  ;;  %1087 = vperm.xlu1 %2656, %v1081_v50  }
  0xa8   : > { %946 = vmatpush1.bf16.msra.mxu0 %v872_v49  ;;  %1092 = vperm.xlu0 %2655, %v1082_v51  }
  0xa9   : > { %v488_v54 = vpop.permute.xlu0 %487  ;;  %v490_v55 = vpop.permute.xlu1 %489 }
  0xaa   : > { %v496_v57 = vsel %vm495_vm1, %v488_v54, %v476_v46  ;;  %v508_v58 = vsel %vm495_vm1, %v476_v46, %v488_v54  ;;  %v497_v59 = vsel %vm495_vm1, %v490_v55, %v478_v47  ;;  %v509_v60 = vsel %vm495_vm1, %v478_v47, %v490_v55 }
  0xab   : > { %v520_v62 = vmul.f32 %v3053_v52, %v508_v58  ;;  %v521_v63 = vmul.f32 %v3056_v53, %v496_v57  ;;  %v522_v8 = vmul.f32 %v3053_v52, %v509_v60  ;;  %v523_v9 = vmul.f32 %v3056_v53, %v497_v59  ;;  %1065 = vperm.xlu1 %2656, %v1051_v56  }
  0xac   : > { %1070 = vperm.xlu0 %2655, %v1052_v61   ;;  %v620_v58 = vsub.s32 3, %v2978_v10 }
  0xad   : > { %v480_v14 = vpop.permute.xlu0 %479  ;;  %v482_v15 = vpop.permute.xlu1 %481  ;;  %v875_v17 = vpack.c.bf16 %v523_v9, %v521_v63  ;;  %v874_v19 = vpack.c.bf16 %v522_v8, %v520_v62 }
  0xaf   : > { %947 = vmatprep.subr.bf16.mxu0 %v875_v17  ;;  %1097 = vperm.xlu1 %2656, %v1083_v20  }
  0xb0   : > { %948 = vmatpush1.bf16.msra.mxu0 %v874_v19  ;;  %1102 = vperm.xlu0 %2655, %v1084_v21   ;;  %v3111_v21 = vrot.slane %v2999_v13, %v620_v58 }
  0xb1   : > { %v492_v23 = vpop.permute.xlu0 %491  ;;  %v494_v24 = vpop.permute.xlu1 %493 }
  0xb2   : > { %v498_v26 = vsel %vm495_vm1, %v492_v23, %v480_v14  ;;  %v510_v27 = vsel %vm495_vm1, %v480_v14, %v492_v23  ;;  %v499_v28 = vsel %vm495_vm1, %v494_v24, %v482_v15  ;;  %v511_v29 = vsel %vm495_vm1, %v482_v15, %v494_v24 }
  0xb3   : > { %v524_v30 = vmul.f32 %v3053_v52, %v510_v27  ;;  %v525_v31 = vmul.f32 %v3056_v53, %v498_v26  ;;  %v526_v32 = vmul.f32 %v3053_v52, %v511_v29  ;;  %v527_v33 = vmul.f32 %v3056_v53, %v499_v28 }
  0xb4   : > { %v3114_v23 = vrot.slane %v2994_v12, %v620_v58  ;;  %v636_v24 = vsub.s32 4, %v2978_v10 }
  0xb5   : > { %v529_v34 = vpop.permute.xlu0 %528  ;;  %v531_v35 = vpop.permute.xlu1 %530  ;;  %v877_v36 = vpack.c.bf16 %v527_v33, %v525_v31  ;;  %v876_v37 = vpack.c.bf16 %v526_v32, %v524_v30 }
  0xb7   : > { %949 = vmatprep.subr.bf16.mxu0 %v877_v36 }
  0xb8   : > { %950 = vmatpush1.bf16.msra.mxu0 %v876_v37 }
  0xb9   : > { %v541_v40 = vpop.permute.xlu0 %540  ;;  %v543_v41 = vpop.permute.xlu1 %542 }
  0xba   : > { %v549_v42 = vsel %vm548_vm2, %v541_v40, %v529_v34  ;;  %v561_v43 = vsel %vm548_vm2, %v529_v34, %v541_v40  ;;  %v550_v44 = vsel %vm548_vm2, %v543_v41, %v531_v35  ;;  %v562_v45 = vsel %vm548_vm2, %v531_v35, %v543_v41 }
  0xbb   : > { %v573_v46 = vmul.f32 %v3088_v38, %v561_v43  ;;  %v574_v47 = vmul.f32 %v3091_v39, %v549_v42  ;;  %v575_v48 = vmul.f32 %v3088_v38, %v562_v45  ;;  %v576_v49 = vmul.f32 %v3091_v39, %v550_v44 }
  0xbc   : > { %v3126_v35 = vrot.slane %v2994_v12, %v636_v24  ;;  %v3133_v44 = vrot.slane %v2999_v13, %v636_v24 }
  0xbd   : > { %v533_v50 = vpop.permute.xlu0 %532  ;;  %v535_v51 = vpop.permute.xlu1 %534  ;;  %v879_v54 = vpack.c.bf16 %v576_v49, %v574_v47  ;;  %v878_v55 = vpack.c.bf16 %v575_v48, %v573_v46 }
  0xbe   : > { %v643_v42 = vmul.f32 %v3126_v35, %v2844_v0  ;;  %v645_v43 = vmul.f32 %v3126_v35, %v2854_v2  ;;  %v644_v58 = vmul.f32 %v3133_v44, %v2857_v3  ;;  %v648_v3 = vmul.f32 %v3133_v44, %v2877_v7 }
  0xbf   : > { %951 = vmatprep.subr.bf16.mxu0 %v879_v54 }
  0xc0   : > { %952 = vmatpush1.bf16.msra.mxu0 %v878_v55  ;;  %v689_v55 = vsub.s32 5, %v2978_v10 }
  0xc1   : > { %v545_v56 = vpop.permute.xlu0 %544  ;;  %v547_v57 = vpop.permute.xlu1 %546 }
  0xc2   : > { %v551_v59 = vsel %vm548_vm2, %v545_v56, %v533_v50  ;;  %v563_v60 = vsel %vm548_vm2, %v533_v50, %v545_v56  ;;  %v552_v61 = vsel %vm548_vm2, %v547_v57, %v535_v51  ;;  %v564_v62 = vsel %vm548_vm2, %v535_v51, %v547_v57 }
  0xc3   : > { %v577_v63 = vmul.f32 %v3088_v38, %v563_v60  ;;  %v578_v8 = vmul.f32 %v3091_v39, %v551_v59  ;;  %v579_v9 = vmul.f32 %v3088_v38, %v564_v62  ;;  %v580_v14 = vmul.f32 %v3091_v39, %v552_v61 }
  0xc4   : > { %v887_v56 = vpack.c.bf16 %v645_v43, %v643_v42  ;;  %v642_v57 = vmul.f32 %v3133_v44, %v2847_v1  ;;  %v646_v1 = vmul.f32 %v3133_v44, %v2874_v6  ;;  %v3164_v6 = vrot.slane %v2999_v13, %v689_v55 }
  0xc5   : > { %v582_v15 = vpop.permute.xlu0 %581  ;;  %v584_v17 = vpop.permute.xlu1 %583  ;;  %v881_v19 = vpack.c.bf16 %v580_v14, %v578_v8  ;;  %v880_v20 = vpack.c.bf16 %v579_v9, %v577_v63  ;;  %v647_v63 = vmul.f32 %v3126_v35, %v2864_v4  ;;  %v649_v8 = vmul.f32 %v3126_v35, %v2867_v5 }
  0xc6   : > { %v886_v9 = vpack.c.bf16 %v644_v58, %v642_v57  ;;  %v3157_v14 = vrot.slane %v2994_v12, %v689_v55  ;;  %v888_v7 = vpack.c.bf16 %v648_v3, %v646_v1  ;;  %v742_v42 = vsub.s32 6, %v2978_v10 }
  0xc7   : > { %953 = vmatprep.subr.bf16.mxu0 %v881_v19  ;;  %v889_v4 = vpack.c.bf16 %v649_v8, %v647_v63 }
  0xc8   : > { %954 = vmatpush1.bf16.msra.mxu0 %v880_v20 }
  0xc9   : > { %v594_v25 = vpop.permute.xlu0 %593  ;;  %v596_v26 = vpop.permute.xlu1 %595 }
  0xca   : > { %v602_v27 = vsel %vm601_vm3, %v594_v25, %v582_v15  ;;  %v614_v28 = vsel %vm601_vm3, %v582_v15, %v594_v25  ;;  %v603_v29 = vsel %vm601_vm3, %v596_v26, %v584_v17  ;;  %v615_v30 = vsel %vm601_vm3, %v584_v17, %v596_v26 }
  0xcb   : > { %v626_v31 = vmul.f32 %v3111_v21, %v614_v28  ;;  %v627_v32 = vmul.f32 %v3114_v23, %v602_v27  ;;  %v628_v33 = vmul.f32 %v3111_v21, %v615_v30  ;;  %v629_v34 = vmul.f32 %v3114_v23, %v603_v29 }
  0xcd   : > { %v586_v36 = vpop.permute.xlu0 %585  ;;  %v588_v37 = vpop.permute.xlu1 %587  ;;  %v883_v40 = vpack.c.bf16 %v629_v34, %v627_v32  ;;  %v882_v41 = vpack.c.bf16 %v628_v33, %v626_v31 }
  0xcf   : > { %955 = vmatprep.subr.bf16.mxu0 %v883_v40 }
  0xd0   : > { %956 = vmatpush1.bf16.msra.mxu0 %v882_v41 }
  0xd1   : > { %v598_v45 = vpop.permute.xlu0 %597  ;;  %v600_v46 = vpop.permute.xlu1 %599 }
  0xd2   : > { %v604_v47 = vsel %vm601_vm3, %v598_v45, %v586_v36  ;;  %v616_v48 = vsel %vm601_vm3, %v586_v36, %v598_v45  ;;  %v605_v49 = vsel %vm601_vm3, %v600_v46, %v588_v37  ;;  %v617_v50 = vsel %vm601_vm3, %v588_v37, %v600_v46 }
  0xd3   : > { %v630_v51 = vmul.f32 %v3111_v21, %v616_v48  ;;  %v631_v0 = vmul.f32 %v3114_v23, %v604_v47  ;;  %v632_v54 = vmul.f32 %v3111_v21, %v617_v50  ;;  %v633_v2 = vmul.f32 %v3114_v23, %v605_v49 }
  0xd5   : > { %v651_v59 = vpop.permute.xlu0 %650  ;;  %v653_v60 = vpop.permute.xlu1 %652  ;;  %v885_v61 = vpack.c.bf16 %v633_v2, %v631_v0  ;;  %v884_v62 = vpack.c.bf16 %v632_v54, %v630_v51  ;;  %v3180_v0 = vrot.slane %v2999_v13, %v742_v42  ;;  %v3183_v54 = vrot.slane %v2994_v12, %v742_v42 }
  0xd6   : > { %v683_v19 = vsel %vm666_vm4, %v653_v60, %v651_v59  ;;  %v667_v25 = vsel %vm666_vm4, %v651_v59, %v653_v60 }
  0xd7   : > { %957 = vmatprep.subr.bf16.mxu0 %v885_v61  ;;  %v696_v26 = vmul.f32 %v3157_v14, %v683_v19  ;;  %v695_v31 = vmul.f32 %v3164_v6, %v667_v25 }
  0xd8   : > { %958 = vmatpush1.bf16.msra.mxu0 %v884_v62 }
  0xd9   : > { %v655_v15 = vpop.permute.xlu0 %654  ;;  %v657_v17 = vpop.permute.xlu1 %656  ;;  %959 = vmatprep.subr.bf16.mxu0 %v887_v56 }
  0xda   : > { %v684_v5 = vsel %vm666_vm4, %v657_v17, %v655_v15  ;;  %v668_v20 = vsel %vm666_vm4, %v655_v15, %v657_v17 }
  0xdb   : > { %v698_v24 = vmul.f32 %v3157_v14, %v684_v5  ;;  %v697_v29 = vmul.f32 %v3164_v6, %v668_v20 }
  0xdc   : > { %960 = vmatpush1.bf16.msra.mxu0 %v886_v9 }
  0xdd   : > { %v659_v27 = vpop.permute.xlu0 %658  ;;  %v661_v28 = vpop.permute.xlu1 %660  ;;  %961 = vmatprep.subr.bf16.mxu0 %v889_v4  ;;  %v891_v30 = vpack.c.bf16 %v698_v24, %v696_v26  ;;  %v890_v41 = vpack.c.bf16 %v697_v29, %v695_v31  ;;  %v795_v24 = vsub.s32 7, %v2978_v10 }
  0xde   : > { %v669_v32 = vsel %vm666_vm4, %v659_v27, %v661_v28  ;;  %v685_v33 = vsel %vm666_vm4, %v661_v28, %v659_v27 }
  0xdf   : > { %v699_v43 = vmul.f32 %v3164_v6, %v669_v32  ;;  %v700_v45 = vmul.f32 %v3157_v14, %v685_v33  ;;  %v3203_v32 = vrot.slane %v2999_v13, %v795_v24  ;;  %v3206_v33 = vrot.slane %v2994_v12, %v795_v24 }
  0xe0   : > { %962 = vmatpush1.bf16.msra.mxu0 %v888_v7 }
  0xe1   : > { %v663_v34 = vpop.permute.xlu0 %662  ;;  %v665_v36 = vpop.permute.xlu1 %664  ;;  %963 = vmatprep.subr.bf16.mxu0 %v891_v30 }
  0xe2   : > { %v670_v37 = vsel %vm666_vm4, %v663_v34, %v665_v36  ;;  %v686_v40 = vsel %vm666_vm4, %v665_v36, %v663_v34 }
  0xe3   : > { %v701_v46 = vmul.f32 %v3164_v6, %v670_v37  ;;  %v702_v47 = vmul.f32 %v3157_v14, %v686_v40 }
  0xe4   : > { %964 = vmatpush1.bf16.msra.mxu0 %v890_v41 }
  0xe5   : > { %v704_v48 = vpop.permute.xlu0 %703  ;;  %v706_v49 = vpop.permute.xlu1 %705  ;;  %v893_v50 = vpack.c.bf16 %v702_v47, %v700_v45  ;;  %v892_v51 = vpack.c.bf16 %v701_v46, %v699_v43 }
  0xe6   : > { %v720_v2 = vsel %vm719_vm5, %v704_v48, %v706_v49  ;;  %v736_v55 = vsel %vm719_vm5, %v706_v49, %v704_v48 }
  0xe7   : > { %965 = vmatprep.subr.bf16.mxu0 %v893_v50  ;;  %v748_v60 = vmul.f32 %v3180_v0, %v720_v2  ;;  %v749_v61 = vmul.f32 %v3183_v54, %v736_v55 }
  0xe8   : > { %966 = vmatpush1.bf16.msra.mxu0 %v892_v51 }
  0xe9   : > { %v708_v56 = vpop.permute.xlu0 %707  ;;  %v710_v57 = vpop.permute.xlu1 %709 }
  0xea   : > { %v721_v58 = vsel %vm719_vm5, %v708_v56, %v710_v57  ;;  %v737_v59 = vsel %vm719_vm5, %v710_v57, %v708_v56 }
  0xeb   : > { %v750_v62 = vmul.f32 %v3180_v0, %v721_v58  ;;  %v751_v63 = vmul.f32 %v3183_v54, %v737_v59 }
  0xed   : > { %v712_v8 = vpop.permute.xlu0 %711  ;;  %v714_v9 = vpop.permute.xlu1 %713  ;;  %v895_v1 = vpack.c.bf16 %v751_v63, %v749_v61  ;;  %v894_v3 = vpack.c.bf16 %v750_v62, %v748_v60  ;;  %v3227_v61 = vld [vmem:[%s4048_s1 + $0x10] ss:$0 sm:$0xff]  ;;  %v3232_v62 = vld [vmem:[%s4048_s1 + $0x18] ss:$0 sm:$0xff] }
  0xee   : > { %v722_v15 = vsel %vm719_vm5, %v712_v8, %v714_v9  ;;  %v738_v17 = vsel %vm719_vm5, %v714_v9, %v712_v8 }
  0xef   : > { %967 = vmatprep.subr.bf16.mxu0 %v895_v1  ;;  %v752_v7 = vmul.f32 %v3180_v0, %v722_v15  ;;  %v753_v25 = vmul.f32 %v3183_v54, %v738_v17 }
  0xf0   : > { %968 = vmatpush1.bf16.msra.mxu0 %v894_v3  ;;  %v2657_v3 = vld [vmem:[%s4049_s2] ss:$12 sps:$4 sm:$0xff]  }
  0xf1   : > { %v716_v4 = vpop.permute.xlu0 %715  ;;  %v718_v19 = vpop.permute.xlu1 %717 }
  0xf2   : > { %v723_v5 = vsel %vm719_vm5, %v716_v4, %v718_v19  ;;  %v739_v20 = vsel %vm719_vm5, %v718_v19, %v716_v4  ;;  %v2660_v4 = vld [vmem:[%s4049_s2 + $0x1c] ss:$12 sps:$4 sm:$0xff]  }
  0xf3   : > { %v754_v26 = vmul.f32 %v3180_v0, %v723_v5  ;;  %v755_v27 = vmul.f32 %v3183_v54, %v739_v20 }
  0xf5   : > { %v757_v28 = vpop.permute.xlu0 %756  ;;  %v759_v29 = vpop.permute.xlu1 %758  ;;  %v897_v30 = vpack.c.bf16 %v755_v27, %v753_v25  ;;  %v896_v31 = vpack.c.bf16 %v754_v26, %v752_v7 }
  0xf6   : > { %v773_v10 = vsel %vm772_vm6, %v757_v28, %v759_v29  ;;  %v789_v34 = vsel %vm772_vm6, %v759_v29, %v757_v28 }
  0xf7   : > { %969 = vmatprep.subr.bf16.mxu0 %v897_v30  ;;  %v801_v42 = vmul.f32 %v3203_v32, %v773_v10  ;;  %v802_v13 = vmul.f32 %v3206_v33, %v789_v34  ;;  %v2662_v10 = vld [vmem:[%s4049_s2 + $0x18] ss:$12 sps:$4 sm:$0xff]  }
  0xf8   : > { %970 = vmatpush1.bf16.msra.mxu0 %v896_v31 }
  0xf9   : > { %v761_v36 = vpop.permute.xlu0 %760  ;;  %v763_v37 = vpop.permute.xlu1 %762 }
  0xfa   : > { %v774_v40 = vsel %vm772_vm6, %v761_v36, %v763_v37  ;;  %v790_v41 = vsel %vm772_vm6, %v763_v37, %v761_v36 }
  0xfb   : > { %v803_v43 = vmul.f32 %v3203_v32, %v774_v40  ;;  %v804_v12 = vmul.f32 %v3206_v33, %v790_v41 }
  0xfd   : > { %v765_v45 = vpop.permute.xlu0 %764  ;;  %v767_v46 = vpop.permute.xlu1 %766  ;;  %v899_v47 = vpack.c.bf16 %v804_v12, %v802_v13  ;;  %v898_v48 = vpack.c.bf16 %v803_v43, %v801_v42 }
  0xfe   : > { %v775_v49 = vsel %vm772_vm6, %v765_v45, %v767_v46  ;;  %v791_v50 = vsel %vm772_vm6, %v767_v46, %v765_v45 }
  0xff   : > { %971 = vmatprep.subr.bf16.mxu0 %v899_v47  ;;  %v805_v57 = vmul.f32 %v3203_v32, %v775_v49  ;;  %v806_v58 = vmul.f32 %v3206_v33, %v791_v50  ;;  %v2664_v49 = vld [vmem:[%s4049_s2 + $0x20] ss:$12 sps:$4 sm:$0xff]  }
 0x100   : > { %972 = vmatpush1.bf16.msra.mxu0 %v898_v48  ;;  %v2663_v48 = vld [vmem:[%s4049_s2 + $0x8] ss:$12 sps:$4 sm:$0xff]  }
 0x101   : > { %v769_v51 = vpop.permute.xlu0 %768  ;;  %v771_v2 = vpop.permute.xlu1 %770 }
 0x102   : > { %v776_v55 = vsel %vm772_vm6, %v769_v51, %v771_v2  ;;  %v792_v56 = vsel %vm772_vm6, %v771_v2, %v769_v51 }
 0x103   : > { %v807_v59 = vmul.f32 %v3203_v32, %v776_v55  ;;  %v808_v60 = vmul.f32 %v3206_v33, %v792_v56 }
 0x105   : > { %v810_v63 = vpop.permute.xlu0 %809  ;;  %v812_v8 = vpop.permute.xlu1 %811  ;;  %v901_v9 = vpack.c.bf16 %v808_v60, %v806_v58  ;;  %v900_v1 = vpack.c.bf16 %v807_v59, %v805_v57 }
 0x106   : > { %v826_v15 = vsel %vm825_vm7, %v810_v63, %v812_v8  ;;  %v842_v17 = vsel %vm825_vm7, %v812_v8, %v810_v63 }
 0x107   : > { %973 = vmatprep.subr.bf16.mxu0 %v901_v9  ;;  %v854_v7 = vmul.f32 %v3227_v61, %v826_v15  ;;  %v855_v25 = vmul.f32 %v3232_v62, %v842_v17 }
 0x108   : > { %974 = vmatpush1.bf16.msra.mxu0 %v900_v1 }
 0x109   : > { %v814_v19 = vpop.permute.xlu0 %813  ;;  %v816_v5 = vpop.permute.xlu1 %815 }
 0x10a   : > { %v827_v20 = vsel %vm825_vm7, %v814_v19, %v816_v5  ;;  %v843_v24 = vsel %vm825_vm7, %v816_v5, %v814_v19 }
 0x10b   : > { %v856_v26 = vmul.f32 %v3227_v61, %v827_v20  ;;  %v857_v27 = vmul.f32 %v3232_v62, %v843_v24  ;;  %976 = vmatmul.mubr.bf16.vlgmr.msra.gmra.mrb[0].mxu0 %v2657_v3 }
 0x10c   : > { %985 = vmatprep.mubr.bf16.mxu0 %v2660_v4 }
 0x10d   : > { %v902_v28 = vpack.c.bf16 %v856_v26, %v854_v7  ;;  %v818_v29 = vpop.permute.xlu0 %817  ;;  %v820_v30 = vpop.permute.xlu1 %819  ;;  %v903_v31 = vpack.c.bf16 %v857_v27, %v855_v25 }
 0x10e   : > { %v828_v34 = vsel %vm825_vm7, %v818_v29, %v820_v30  ;;  %v844_v36 = vsel %vm825_vm7, %v820_v30, %v818_v29 }
 0x10f   : > { %996 = vmatprep.subr.bf16.mxu0 %v903_v31  ;;  %v858_v13 = vmul.f32 %v3227_v61, %v828_v34  ;;  %v859_v43 = vmul.f32 %v3232_v62, %v844_v36 }
 0x110   : > { %997 = vmatpush1.bf16.msra.mxu0 %v902_v28 }
 0x111   : > { %v822_v37 = vpop.permute.xlu0 %821  ;;  %v824_v40 = vpop.permute.xlu1 %823 }
 0x112   : > { %v829_v41 = vsel %vm825_vm7, %v822_v37, %v824_v40  ;;  %v845_v42 = vsel %vm825_vm7, %v824_v40, %v822_v37 }
 0x113   : > { %v860_v12 = vmul.f32 %v3227_v61, %v829_v41  ;;  %v861_v45 = vmul.f32 %v3232_v62, %v845_v42  ;;  %986 = vmatmul.mubr.bf16.gmra.mrb[4].mxu0 %v2662_v10 }
 0x114   : > { %1028 = vmatprep.mubr.bf16.mxu0 %v2747_v22 }
 0x115   : > { %v904_v46 = vpack.c.bf16 %v860_v12, %v858_v13  ;;  %v905_v47 = vpack.c.bf16 %v861_v45, %v859_v43 }
 0x117   : > { %998 = vmatprep.subr.bf16.mxu0 %v905_v47 }
 0x118   : > { %999 = vmatpush1.bf16.msra.mxu0 %v904_v46  ;;  %v2667_v46 = vld [vmem:[%s4052_s5 + $0x4] ss:$12 sps:$4 sm:$0xff]  }
 0x119   : > { %1601 = vmatprep.mubr.bf16.mxu1 %v2667_v46 }
 0x11b   : > { %2530 = vmatmul.mubr.msk.bf16.vlgmr.msra.gmra.mrb[0].mxu0 %vm936_vm8, %v2663_v48 }
 0x11c   : > { %1038 = vmatprep.mubr.bf16.mxu0 %v2747_v22 }
 0x122   : > { %v1061_v50 = vpop.permute.xlu1 %1060 }
 0x123   : > { %2531 = vmatmul.mubr.msk.bf16.gmra.mrb[4].mxu0 %vm936_vm8, %v2664_v49  ;;  %v1056_v51 = vpop.permute.xlu0 %1055 }
 0x126   : > { %v1088_v57 = vpop.permute.xlu1 %1087 }
 0x127   : > { %v1093_v1 = vpop.permute.xlu0 %1092 }
 0x12a   : > { %v1066_v27 = vpop.permute.xlu1 %1065 }
 0x12b   : > { %v1071_v28 = vpop.permute.xlu0 %1070 }
 0x12e   : > { %v1098_v31 = vpop.permute.xlu1 %1097 }
 0x12f   : > { %v1103_v10 = vpop.permute.xlu0 %1102 }
 0x1ee   : > { %v1030_v2 = vpop.f32.mrb[0].mxu0 }
 0x1ef   : > { %v1073_v55 = vmul.f32 %v1056_v51, %v1030_v2  ;;  %v1032_v56 = vpop.f32.mrb[1].mxu0 }
 0x1f0   : > { %v1074_v58 = vmul.f32 %v1056_v51, %v1032_v56  ;;  %v1034_v59 = vpop.f32.mrb[2].mxu0 }
 0x1f1   : > { %v1105_v60 = vadd.f32 %v1088_v57, %v1073_v55  ;;  %v1075_v63 = vmul.f32 %v1061_v50, %v1034_v59  ;;  %v1036_v8 = vpop.f32.mrb[3].mxu0  ;;  %v1675_v55 = vld [vmem:[%s4053_s6] sm:$0xff] }
 0x1f2   : > { %v1106_v9 = vadd.f32 %v1088_v57, %v1074_v58  ;;  %v1076_v7 = vmul.f32 %v1061_v50, %v1036_v8  ;;  %v1676_v57 = vld [vmem:[%s4053_s6 + $0x8] sm:$0xff]  ;;  %v1707_v59 = vld [vmem:[%s4054_s7] sm:$0xff] }
 0x1f3   : > { %v3269_v3 = vmax.f32 %v1105_v60, 0.0  ;;  %v1107_v17 = vadd.f32 %v1093_v1, %v1075_v63  ;;  %v1708_v63 = vld [vmem:[%s4054_s7 + $0x8] sm:$0xff] }
 0x1f4   : > { %v3271_v15 = vmax.f32 %v1106_v9, 0.0  ;;  %v1108_v25 = vadd.f32 %v1093_v1, %v1076_v7  ;;  %v1677_v9 = vld [vmem:[%s4053_s6 + $0x10] sm:$0xff] }
 0x1f5   : > { %1141 = vrot.lane.b32.xlu1 %v3269_v3, %s2739_s29  ;;  %v3277_v5 = vmax.f32 %v1107_v17, 0.0  ;;  %v1678_v17 = vld [vmem:[%s4053_s6 + $0x18] sm:$0xff] }
 0x1f6   : > { %1315 = vrot.lane.b32.xlu0 %v3271_v15, %s2743_s14  ;;  %v1040_v4 = vpop.f32.mrb[4].mxu0  ;;  %v3295_v26 = vmax.f32 %v1108_v25, 0.0 }
 0x1f7   : > { %v1042_v19 = vpop.f32.mrb[5].mxu0  ;;  %v1077_v29 = vmul.f32 %v1066_v27, %v1040_v4 }
 0x1f8   : > { %v1044_v20 = vpop.f32.mrb[6].mxu0  ;;  %v1078_v41 = vmul.f32 %v1066_v27, %v1042_v19 }
 0x1f9   : > { %1185 = vrot.lane.b32.xlu1 %v3269_v3, %s2740_s30  ;;  %v1046_v24 = vpop.f32.mrb[7].mxu0  ;;  %v1079_v30 = vmul.f32 %v1071_v28, %v1044_v20  ;;  %v1109_v34 = vadd.f32 %v1098_v31, %v1077_v29 }
 0x1fa   : > { %1143 = vrot.lane.b32.xlu0 %v3277_v5, %s2739_s29  ;;  %v1080_v42 = vmul.f32 %v1071_v28, %v1046_v24  ;;  %v1110_v13 = vadd.f32 %v1098_v31, %v1078_v41  ;;  %v1709_v28 = vld [vmem:[%s4054_s7 + $0x10] sm:$0xff] }
 0x1fb   : > { %v1111_v36 = vadd.f32 %v1103_v10, %v1079_v30  ;;  %v3313_v37 = vmax.f32 %v1109_v34, 0.0 }
 0x1fc   : > { %v1112_v43 = vadd.f32 %v1103_v10, %v1080_v42  ;;  %v3333_v12 = vmax.f32 %v1110_v13, 0.0  ;;  %v1710_v10 = vld [vmem:[%s4054_s7 + $0x18] sm:$0xff] }
 0x1fd   : > { %1229 = vrot.lane.b32.xlu1 %v3269_v3, %s2741_s12  ;;  %v3315_v40 = vmax.f32 %v1111_v36, 0.0 }
 0x1fe   : > { %1187 = vrot.lane.b32.xlu0 %v3277_v5, %s2740_s30  ;;  %v3335_v45 = vmax.f32 %v1112_v43, 0.0 }
 0x201   : > { %1273 = vrot.lane.b32.xlu1 %v3269_v3, %s2742_s13 }
 0x202   : > { %1231 = vrot.lane.b32.xlu0 %v3277_v5, %s2741_s12 }
 0x205   : > { %1313 = vrot.lane.b32.xlu1 %v3269_v3, %s2743_s14 }
 0x206   : > { %1275 = vrot.lane.b32.xlu0 %v3277_v5, %s2742_s13 }
 0x209   : > { %1125 = vrot.lane.b32.xlu1 %v3271_v15, %s2739_s29 }
 0x20a   : > { %1127 = vrot.lane.b32.xlu0 %v3295_v26, %s2739_s29 }
 0x20d   : > { %1173 = vrot.lane.b32.xlu1 %v3271_v15, %s2740_s30 }
 0x20e   : > { %1175 = vrot.lane.b32.xlu0 %v3295_v26, %s2740_s30 }
 0x211   : > { %1217 = vrot.lane.b32.xlu1 %v3271_v15, %s2741_s12 }
 0x212   : > { %1219 = vrot.lane.b32.xlu0 %v3295_v26, %s2741_s12 }
 0x215   : > { %1261 = vrot.lane.b32.xlu1 %v3271_v15, %s2742_s13 }
 0x216   : > { %1263 = vrot.lane.b32.xlu0 %v3295_v26, %s2742_s13 }
 0x219   : > { %1145 = vrot.lane.b32.xlu1 %v3313_v37, %s2739_s29 }
 0x21a   : > { %1147 = vrot.lane.b32.xlu0 %v3315_v40, %s2739_s29 }
 0x21d   : > { %1189 = vrot.lane.b32.xlu1 %v3313_v37, %s2740_s30 }
 0x21e   : > { %1191 = vrot.lane.b32.xlu0 %v3315_v40, %s2740_s30 }
 0x221   : > { %1233 = vrot.lane.b32.xlu1 %v3313_v37, %s2741_s12 }
 0x222   : > { %1235 = vrot.lane.b32.xlu0 %v3315_v40, %s2741_s12 }
 0x225   : > { %1277 = vrot.lane.b32.xlu1 %v3313_v37, %s2742_s13 }
 0x226   : > { %1279 = vrot.lane.b32.xlu0 %v3315_v40, %s2742_s13 }
 0x229   : > { %1129 = vrot.lane.b32.xlu1 %v3333_v12, %s2739_s29 }
 0x22a   : > { %1131 = vrot.lane.b32.xlu0 %v3335_v45, %s2739_s29 }
 0x22d   : > { %1317 = vrot.lane.b32.xlu1 %v3277_v5, %s2743_s14 }
 0x22e   : > { %1319 = vrot.lane.b32.xlu0 %v3295_v26, %s2743_s14 }
 0x231   : > { %1177 = vrot.lane.b32.xlu1 %v3333_v12, %s2740_s30 }
 0x232   : > { %1179 = vrot.lane.b32.xlu0 %v3335_v45, %s2740_s30 }
 0x235   : > { %1221 = vrot.lane.b32.xlu1 %v3333_v12, %s2741_s12 }
 0x236   : > { %1323 = vrot.lane.b32.xlu0 %v3333_v12, %s2743_s14 }
 0x239   : > { %1265 = vrot.lane.b32.xlu1 %v3333_v12, %s2742_s13 }
 0x23a   : > { %1223 = vrot.lane.b32.xlu0 %v3335_v45, %s2741_s12 }
 0x23d   : > { %1321 = vrot.lane.b32.xlu1 %v3313_v37, %s2743_s14 }
 0x23e   : > { %1359 = vrot.lane.b32.xlu0 %v3271_v15, %s2744_s15 }
 0x241   : > { %1325 = vrot.lane.b32.xlu1 %v3315_v40, %s2743_s14 }
 0x242   : > { %1267 = vrot.lane.b32.xlu0 %v3335_v45, %s2742_s13 }
 0x245   : > { %1357 = vrot.lane.b32.xlu1 %v3269_v3, %s2744_s15 }
 0x246   : > { %1363 = vrot.lane.b32.xlu0 %v3295_v26, %s2744_s15 }
 0x249   : > { %1361 = vrot.lane.b32.xlu1 %v3277_v5, %s2744_s15 }
 0x24a   : > { %1367 = vrot.lane.b32.xlu0 %v3333_v12, %s2744_s15 }
 0x24d   : > { %1365 = vrot.lane.b32.xlu1 %v3313_v37, %s2744_s15 }
 0x24e   : > { %1403 = vrot.lane.b32.xlu0 %v3271_v15, %s2745_s16 }
 0x251   : > { %1369 = vrot.lane.b32.xlu1 %v3315_v40, %s2744_s15 }
 0x252   : > { %1327 = vrot.lane.b32.xlu0 %v3335_v45, %s2743_s14 }
 0x255   : > { %1401 = vrot.lane.b32.xlu1 %v3269_v3, %s2745_s16 }
 0x256   : > { %1407 = vrot.lane.b32.xlu0 %v3295_v26, %s2745_s16 }
 0x259   : > { %1405 = vrot.lane.b32.xlu1 %v3277_v5, %s2745_s16 }
 0x25a   : > { %1371 = vrot.lane.b32.xlu0 %v3335_v45, %s2744_s15 }
 0x25d   : > { %1409 = vrot.lane.b32.xlu1 %v3313_v37, %s2745_s16 }
 0x25e   : > { %1411 = vrot.lane.b32.xlu0 %v3333_v12, %s2745_s16 }
 0x261   : > { %1413 = vrot.lane.b32.xlu1 %v3315_v40, %s2745_s16 }
 0x262   : > { %1415 = vrot.lane.b32.xlu0 %v3335_v45, %s2745_s16 }
 0x265   : > { %1445 = vrot.lane.b32.xlu1 %v3269_v3, %s2746_s21 }
 0x266   : > { %1447 = vrot.lane.b32.xlu0 %v3271_v15, %s2746_s21 }
 0x267   : > { %v1142_v47 = vpop.permute.xlu1 %1141 }
 0x268   : > { %v3404_v48 = vpop.permute.xlu0 %1315 }
 0x269   : > { %1449 = vrot.lane.b32.xlu1 %v3277_v5, %s2746_s21 }
 0x26a   : > { %1451 = vrot.lane.b32.xlu0 %v3295_v26, %s2746_s21 }
 0x26b   : > { %v1186_v49 = vpop.permute.xlu1 %1185 }
 0x26c   : > { %v1144_v50 = vpop.permute.xlu0 %1143 }
 0x26d   : > { %1453 = vrot.lane.b32.xlu1 %v3313_v37, %s2746_s21 }
 0x26e   : > { %1455 = vrot.lane.b32.xlu0 %v3333_v12, %s2746_s21 }
 0x26f   : > { %v3414_v51 = vpop.permute.xlu1 %1229 }
 0x270   : > { %v1188_v2 = vpop.permute.xlu0 %1187 }
 0x271   : > { %1457 = vrot.lane.b32.xlu1 %v3315_v40, %s2746_s21 }
 0x272   : > { %1459 = vrot.lane.b32.xlu0 %v3335_v45, %s2746_s21 }
 0x273   : > { %v3423_v56 = vpop.permute.xlu1 %1273 }
 0x274   : > { %v3428_v58 = vpop.permute.xlu0 %1231 }
 0x275   : > { %1681 = vperm.xlu1 %2656, %v1675_v55  }
 0x276   : > { %1686 = vperm.xlu0 %2655, %v1676_v57  }
 0x277   : > { %v3433_v60 = vpop.permute.xlu1 %1313 }
 0x278   : > { %v3438_v8 = vpop.permute.xlu0 %1275 }
 0x279   : > { %1713 = vperm.xlu1 %2656, %v1707_v59  }
 0x27a   : > { %1718 = vperm.xlu0 %2655, %v1708_v63  }
 0x27b   : > { %v1126_v1 = vpop.permute.xlu1 %1125 }
 0x27c   : > { %v1161_v4 = vsel %vm442_vm0, %v1126_v1, %v1142_v47  ;;  %v1128_v19 = vpop.permute.xlu0 %1127  ;;  %v1149_v20 = vsel %vm442_vm0, %v1142_v47, %v1126_v1 }
 0x27d   : > { %v1162_v24 = vsel %vm442_vm0, %v1128_v19, %v1144_v50  ;;  %1691 = vperm.xlu1 %2656, %v1677_v9   ;;  %v1150_v7 = vsel %vm442_vm0, %v1144_v50, %v1128_v19  ;;  %v1166_v25 = vmul.f32 %v1149_v20, %v3003_v16  ;;  %v1165_v27 = vmul.f32 %v1161_v4, %v3012_v18 }
 0x27e   : > { %1696 = vperm.xlu0 %2655, %v1678_v17   ;;  %v1168_v29 = vmul.f32 %v1150_v7, %v3003_v16  ;;  %v1167_v30 = vmul.f32 %v1162_v24, %v3012_v18 }
 0x27f   : > { %v1174_v31 = vpop.permute.xlu1 %1173 }
 0x280   : > { %v1176_v34 = vpop.permute.xlu0 %1175  ;;  %v1498_v36 = vpack.c.bf16 %v1168_v29, %v1166_v25  ;;  %v1497_v41 = vpack.c.bf16 %v1167_v30, %v1165_v27  ;;  %v1193_v17 = vsel %vm495_vm1, %v1186_v49, %v1174_v31  ;;  %v1205_v20 = vsel %vm495_vm1, %v1174_v31, %v1186_v49 }
 0x281   : > { %1723 = vperm.xlu1 %2656, %v1709_v28   ;;  %v1194_v4 = vsel %vm495_vm1, %v1188_v2, %v1176_v34  ;;  %v1206_v24 = vsel %vm495_vm1, %v1176_v34, %v1188_v2  ;;  %v1209_v34 = vmul.f32 %v1205_v20, %v3053_v52 }
 0x282   : > { %1569 = vmatprep.subr.bf16.mxu1 %v1498_v36  ;;  %1728 = vperm.xlu0 %2655, %v1710_v10   ;;  %v1210_v36 = vmul.f32 %v1193_v17, %v3056_v53 }
 0x283   : > { %v1218_v42 = vpop.permute.xlu1 %1217  ;;  %1570 = vmatpush1.bf16.msra.mxu1 %v1497_v41  ;;  %v1212_v41 = vmul.f32 %v1194_v4, %v3056_v53 }
 0x284   : > { %v1220_v13 = vpop.permute.xlu0 %1219  ;;  %v1237_v17 = vsel %vm548_vm2, %v3414_v51, %v1218_v42 }
 0x285   : > { %v1250_v20 = vsel %vm548_vm2, %v1220_v13, %v3428_v58 }
 0x287   : > { %v3460_v43 = vpop.permute.xlu1 %1261 }
 0x288   : > { %v3462_v46 = vpop.permute.xlu0 %1263 }
 0x28b   : > { %v1146_v47 = vpop.permute.xlu1 %1145 }
 0x28c   : > { %v1148_v50 = vpop.permute.xlu0 %1147 }
 0x28f   : > { %v1190_v55 = vpop.permute.xlu1 %1189 }
 0x290   : > { %v1192_v57 = vpop.permute.xlu0 %1191 }
 0x293   : > { %v1234_v59 = vpop.permute.xlu1 %1233 }
 0x294   : > { %v3464_v63 = vpop.permute.xlu0 %1235 }
 0x297   : > { %v3466_v9 = vpop.permute.xlu1 %1277 }
 0x298   : > { %v3468_v1 = vpop.permute.xlu0 %1279 }
 0x29b   : > { %v1130_v19 = vpop.permute.xlu1 %1129 }
 0x29c   : > { %v1151_v7 = vsel %vm442_vm0, %v1146_v47, %v1130_v19  ;;  %v1163_v25 = vsel %vm442_vm0, %v1130_v19, %v1146_v47  ;;  %v1132_v27 = vpop.permute.xlu0 %1131  ;;  %v1211_v47 = vmul.f32 %v1206_v24, %v3053_v52 }
 0x29d   : > { %v1169_v28 = vmul.f32 %v1163_v25, %v3012_v18  ;;  %v1170_v29 = vmul.f32 %v1151_v7, %v3003_v16  ;;  %v1152_v30 = vsel %vm442_vm0, %v1148_v50, %v1132_v27  ;;  %v1164_v10 = vsel %vm442_vm0, %v1132_v27, %v1148_v50 }
 0x29e   : > { %v1171_v49 = vmul.f32 %v1164_v10, %v3012_v18  ;;  %v1172_v2 = vmul.f32 %v1152_v30, %v3003_v16  ;;  %v1502_v50 = vpack.c.bf16 %v1212_v41, %v1210_v36  ;;  %v1249_v18 = vsel %vm548_vm2, %v1218_v42, %v3414_v51 }
 0x29f   : > { %v3484_v31 = vpop.permute.xlu1 %1317  ;;  %v1238_v16 = vsel %vm548_vm2, %v3428_v58, %v1220_v13  ;;  %v1254_v36 = vmul.f32 %v1237_v17, %v3091_v39 }
 0x2a0   : > { %v3488_v19 = vpop.permute.xlu0 %1319  ;;  %v1500_v7 = vpack.c.bf16 %v1172_v2, %v1170_v29  ;;  %v1499_v25 = vpack.c.bf16 %v1171_v49, %v1169_v28  ;;  %v1501_v29 = vpack.c.bf16 %v1211_v47, %v1209_v34  ;;  %v1256_v41 = vmul.f32 %v1238_v16, %v3091_v39 }
 0x2a1   : > { %v1253_v49 = vmul.f32 %v1249_v18, %v3088_v38  ;;  %v1255_v2 = vmul.f32 %v1250_v20, %v3088_v38  ;;  %v1293_v18 = vsel %vm601_vm3, %v3460_v43, %v3423_v56 }
 0x2a2   : > { %1571 = vmatprep.subr.bf16.mxu1 %v1500_v7 }
 0x2a3   : > { %v1178_v4 = vpop.permute.xlu1 %1177  ;;  %1572 = vmatpush1.bf16.msra.mxu1 %v1499_v25  ;;  %v1505_v20 = vpack.c.bf16 %v1255_v2, %v1253_v49  ;;  %v1308_v2 = vmul.f32 %v3295_v26, %v3126_v35 }
 0x2a4   : > { %v1195_v24 = vsel %vm495_vm1, %v1190_v55, %v1178_v4  ;;  %v1207_v27 = vsel %vm495_vm1, %v1178_v4, %v1190_v55  ;;  %1573 = vmatprep.subr.bf16.mxu1 %v1502_v50  ;;  %v1180_v28 = vpop.permute.xlu0 %1179 }
 0x2a5   : > { %v1213_v30 = vmul.f32 %v1207_v27, %v3053_v52  ;;  %v1214_v10 = vmul.f32 %v1195_v24, %v3056_v53  ;;  %v1196_v51 = vsel %vm495_vm1, %v1192_v57, %v1180_v28  ;;  %v1208_v42 = vsel %vm495_vm1, %v1180_v28, %v1192_v57 }
 0x2a6   : > { %v1215_v58 = vmul.f32 %v1208_v42, %v3053_v52  ;;  %v1216_v13 = vmul.f32 %v1196_v51, %v3056_v53  ;;  %v1281_v57 = vsel %vm601_vm3, %v3423_v56, %v3460_v43  ;;  %v1282_v52 = vsel %vm601_vm3, %v3438_v8, %v3462_v46 }
 0x2a7   : > { %v1222_v55 = vpop.permute.xlu1 %1221  ;;  %1574 = vmatpush1.bf16.msra.mxu1 %v1501_v29  ;;  %v1506_v53 = vpack.c.bf16 %v1256_v41, %v1254_v36  ;;  %v1298_v16 = vmul.f32 %v1281_v57, %v3114_v23  ;;  %v1294_v24 = vsel %vm601_vm3, %v3462_v46, %v3438_v8  ;;  %v1300_v27 = vmul.f32 %v1282_v52, %v3114_v23 }
 0x2a8   : > { %v3510_v34 = vpop.permute.xlu0 %1323  ;;  %v1504_v47 = vpack.c.bf16 %v1216_v13, %v1214_v10  ;;  %v1503_v7 = vpack.c.bf16 %v1215_v58, %v1213_v30  ;;  %v1239_v25 = vsel %vm548_vm2, %v1234_v59, %v1222_v55  ;;  %v1251_v50 = vsel %vm548_vm2, %v1222_v55, %v1234_v59 }
 0x2a9   : > { %v1257_v29 = vmul.f32 %v1251_v50, %v3088_v38  ;;  %v1258_v56 = vmul.f32 %v1239_v25, %v3091_v39  ;;  %v1297_v42 = vmul.f32 %v1293_v18, %v3111_v21  ;;  %v1299_v36 = vmul.f32 %v1294_v24, %v3111_v21 }
 0x2aa   : > { %1575 = vmatprep.subr.bf16.mxu1 %v1504_v47  ;;  %v1312_v18 = vmul.f32 %v3335_v45, %v3126_v35  ;;  %v1330_v45 = vsel %vm666_vm4, %v3484_v31, %v3488_v19  ;;  %v1311_v24 = vmul.f32 %v3315_v40, %v3133_v44 }
 0x2ab   : > { %v1266_v17 = vpop.permute.xlu1 %1265  ;;  %1576 = vmatpush1.bf16.msra.mxu1 %v1503_v7  ;;  %v1509_v49 = vpack.c.bf16 %v1299_v36, %v1297_v42 }
 0x2ac   : > { %1577 = vmatprep.subr.bf16.mxu1 %v1506_v53  ;;  %v1224_v4 = vpop.permute.xlu0 %1223  ;;  %v1283_v41 = vsel %vm601_vm3, %v3466_v9, %v1266_v17 }
 0x2ad   : > { %v1240_v59 = vsel %vm548_vm2, %v3464_v63, %v1224_v4  ;;  %v1252_v28 = vsel %vm548_vm2, %v1224_v4, %v3464_v63  ;;  %v1510_v63 = vpack.c.bf16 %v1300_v27, %v1298_v16  ;;  %v1302_v7 = vmul.f32 %v1283_v41, %v3114_v23 }
 0x2ae   : > { %v1259_v43 = vmul.f32 %v1252_v28, %v3088_v38  ;;  %v1260_v30 = vmul.f32 %v1240_v59, %v3091_v39  ;;  %v1295_v38 = vsel %vm601_vm3, %v1266_v17, %v3466_v9  ;;  %v1307_v17 = vmul.f32 %v3277_v5, %v3133_v44 }
 0x2af   : > { %v1322_v10 = vpop.permute.xlu1 %1321  ;;  %1578 = vmatpush1.bf16.msra.mxu1 %v1505_v20  ;;  %v1301_v47 = vmul.f32 %v1295_v38, %v3111_v21  ;;  %v1305_v16 = vmul.f32 %v3269_v3, %v3133_v44  ;;  %v1345_v5 = vsel %vm666_vm4, %v3404_v48, %v3433_v60  ;;  %v1329_v59 = vsel %vm666_vm4, %v3433_v60, %v3404_v48 }
 0x2b0   : > { %v3536_v51 = vpop.permute.xlu0 %1359  ;;  %v1508_v8 = vpack.c.bf16 %v1260_v30, %v1258_v56  ;;  %v1507_v46 = vpack.c.bf16 %v1259_v43, %v1257_v29  ;;  %v1350_v28 = vmul.f32 %v1345_v5, %v3157_v14  ;;  %v1331_v40 = vsel %vm666_vm4, %v1322_v10, %v3510_v34 }
 0x2b1   : > { %v1513_v20 = vpack.c.bf16 %v1307_v17, %v1305_v16  ;;  %v1349_v56 = vmul.f32 %v1329_v59, %v3164_v6  ;;  %v1347_v48 = vsel %vm666_vm4, %v3510_v34, %v1322_v10 }
 0x2b2   : > { %1579 = vmatprep.subr.bf16.mxu1 %v1508_v8  ;;  %v1354_v34 = vmul.f32 %v1347_v48, %v3157_v14 }
 0x2b3   : > { %v1326_v58 = vpop.permute.xlu1 %1325  ;;  %1580 = vmatpush1.bf16.msra.mxu1 %v1507_v46 }
 0x2b4   : > { %1581 = vmatprep.subr.bf16.mxu1 %v1510_v63  ;;  %v1268_v39 = vpop.permute.xlu0 %1267 }
 0x2b5   : > { %v1284_v13 = vsel %vm601_vm3, %v3468_v1, %v1268_v39  ;;  %v1296_v55 = vsel %vm601_vm3, %v1268_v39, %v3468_v1  ;;  %v1306_v1 = vmul.f32 %v3271_v15, %v3126_v35  ;;  %v1310_v15 = vmul.f32 %v3333_v12, %v3126_v35 }
 0x2b6   : > { %v1303_v9 = vmul.f32 %v1296_v55, %v3111_v21  ;;  %v1304_v57 = vmul.f32 %v1284_v13, %v3114_v23  ;;  %v1346_v21 = vsel %vm666_vm4, %v3488_v19, %v3484_v31  ;;  %v1309_v12 = vmul.f32 %v3313_v37, %v3133_v44 }
 0x2b7   : > { %v1358_v52 = vpop.permute.xlu1 %1357  ;;  %1582 = vmatpush1.bf16.msra.mxu1 %v1509_v49  ;;  %v1514_v26 = vpack.c.bf16 %v1308_v2, %v1306_v1  ;;  %v1352_v27 = vmul.f32 %v1346_v21, %v3157_v14  ;;  %v1516_v3 = vpack.c.bf16 %v1312_v18, %v1310_v15  ;;  %v1351_v31 = vmul.f32 %v1330_v45, %v3164_v6 }
 0x2b8   : > { %v1364_v53 = vpop.permute.xlu0 %1363  ;;  %v1512_v25 = vpack.c.bf16 %v1304_v57, %v1302_v7  ;;  %v1511_v50 = vpack.c.bf16 %v1303_v9, %v1301_v47  ;;  %v1515_v29 = vpack.c.bf16 %v1311_v24, %v1309_v12  ;;  %v1353_v44 = vmul.f32 %v1331_v40, %v3164_v6 }
 0x2b9   : > { %v1518_v43 = vpack.c.bf16 %v1352_v27, %v1350_v28  ;;  %v1517_v8 = vpack.c.bf16 %v1351_v31, %v1349_v56  ;;  %v1389_v46 = vsel %vm719_vm5, %v3536_v51, %v1358_v52  ;;  %v1373_v39 = vsel %vm719_vm5, %v1358_v52, %v3536_v51 }
 0x2ba   : > { %1583 = vmatprep.subr.bf16.mxu1 %v1512_v25  ;;  %v1394_v55 = vmul.f32 %v1389_v46, %v3183_v54  ;;  %v1393_v9 = vmul.f32 %v1373_v39, %v3180_v0 }
 0x2bb   : > { %v1362_v23 = vpop.permute.xlu1 %1361  ;;  %1584 = vmatpush1.bf16.msra.mxu1 %v1511_v50 }
 0x2bc   : > { %1585 = vmatprep.subr.bf16.mxu1 %v1514_v26  ;;  %v1368_v4 = vpop.permute.xlu0 %1367  ;;  %v1390_v60 = vsel %vm719_vm5, %v1364_v53, %v1362_v23  ;;  %v1374_v42 = vsel %vm719_vm5, %v1362_v23, %v1364_v53 }
 0x2bd   : > { %v1396_v10 = vmul.f32 %v1390_v60, %v3183_v54  ;;  %v1395_v49 = vmul.f32 %v1374_v42, %v3180_v0 }
 0x2bf   : > { %v1366_v35 = vpop.permute.xlu1 %1365  ;;  %1586 = vmatpush1.bf16.msra.mxu1 %v1513_v20  ;;  %v1521_v25 = vpack.c.bf16 %v1395_v49, %v1393_v9 }
 0x2c0   : > { %v1404_v19 = vpop.permute.xlu0 %1403  ;;  %1587 = vmatprep.subr.bf16.mxu1 %v1516_v3  ;;  %v1375_v7 = vsel %vm719_vm5, %v1366_v35, %v1368_v4 }
 0x2c1   : > { %v1397_v51 = vmul.f32 %v1375_v7, %v3180_v0 }
 0x2c3   : > { %v1370_v30 = vpop.permute.xlu1 %1369  ;;  %1588 = vmatpush1.bf16.msra.mxu1 %v1515_v29 }
 0x2c4   : > { %v1328_v37 = vpop.permute.xlu0 %1327  ;;  %1589 = vmatprep.subr.bf16.mxu1 %v1518_v43 }
 0x2c5   : > { %v1332_v36 = vsel %vm666_vm4, %v1326_v58, %v1328_v37  ;;  %v1348_v63 = vsel %vm666_vm4, %v1328_v37, %v1326_v58  ;;  %v2665_v37 = vld [vmem:[%s4052_s5] ss:$12 sps:$4 sm:$0xff]  }
 0x2c6   : > { %v1355_v41 = vmul.f32 %v1332_v36, %v3164_v6  ;;  %v1356_v38 = vmul.f32 %v1348_v63, %v3157_v14  ;;  %v1391_v6 = vsel %vm719_vm5, %v1368_v4, %v1366_v35  ;;  %v1522_v14 = vpack.c.bf16 %v1396_v10, %v1394_v55 }
 0x2c7   : > { %v1402_v13 = vpop.permute.xlu1 %1401  ;;  %1590 = vmatpush1.bf16.msra.mxu1 %v1517_v8  ;;  %v1398_v50 = vmul.f32 %v1391_v6, %v3183_v54 }
 0x2c8   : > { %v1408_v2 = vpop.permute.xlu0 %1407  ;;  %v1520_v47 = vpack.c.bf16 %v1356_v38, %v1354_v34  ;;  %v1519_v58 = vpack.c.bf16 %v1355_v41, %v1353_v44  ;;  %v1433_v1 = vsel %vm772_vm6, %v1404_v19, %v1402_v13  ;;  %v1417_v15 = vsel %vm772_vm6, %v1402_v13, %v1404_v19 }
 0x2c9   : > { %v1438_v5 = vmul.f32 %v1433_v1, %v3206_v33  ;;  %v1437_v59 = vmul.f32 %v1417_v15, %v3203_v32  ;;  %v2671_v1 = vld [vmem:[%s4052_s5 + $0x8] ss:$12 sps:$4 sm:$0xff]  }
 0x2ca   : > { %1591 = vmatprep.subr.bf16.mxu1 %v1520_v47 }
 0x2cb   : > { %v1406_v57 = vpop.permute.xlu1 %1405  ;;  %1592 = vmatpush1.bf16.msra.mxu1 %v1519_v58 }
 0x2cc   : > { %v1434_v52 = vsel %vm772_vm6, %v1408_v2, %v1406_v57  ;;  %v1372_v53 = vpop.permute.xlu0 %1371  ;;  %1593 = vmatprep.subr.bf16.mxu1 %v1522_v14  ;;  %v1418_v18 = vsel %vm772_vm6, %v1406_v57, %v1408_v2  ;;  %v2670_v2 = vld [vmem:[%s4052_s5 + $0x18] ss:$12 sps:$4 sm:$0xff]  }
 0x2cd   : > { %v1376_v17 = vsel %vm719_vm5, %v1370_v30, %v1372_v53  ;;  %v1392_v26 = vsel %vm719_vm5, %v1372_v53, %v1370_v30  ;;  %v1440_v21 = vmul.f32 %v1434_v52, %v3206_v33  ;;  %v1439_v27 = vmul.f32 %v1418_v18, %v3203_v32 }
 0x2ce   : > { %v1399_v23 = vmul.f32 %v1376_v17, %v3180_v0  ;;  %v1400_v16 = vmul.f32 %v1392_v26, %v3183_v54 }
 0x2cf   : > { %v1410_v4 = vpop.permute.xlu1 %1409  ;;  %1594 = vmatpush1.bf16.msra.mxu1 %v1521_v25  ;;  %v1526_v3 = vpack.c.bf16 %v1440_v21, %v1438_v5  ;;  %v1525_v19 = vpack.c.bf16 %v1439_v27, %v1437_v59 }
 0x2d0   : > { %v1412_v45 = vpop.permute.xlu0 %1411  ;;  %v1524_v20 = vpack.c.bf16 %v1400_v16, %v1398_v50  ;;  %v1523_v24 = vpack.c.bf16 %v1399_v23, %v1397_v51 }
 0x2d1   : > { %v1419_v35 = vsel %vm772_vm6, %v1410_v4, %v1412_v45  ;;  %v1435_v0 = vsel %vm772_vm6, %v1412_v45, %v1410_v4 }
 0x2d2   : > { %1595 = vmatprep.subr.bf16.mxu1 %v1524_v20  ;;  %v1441_v40 = vmul.f32 %v1419_v35, %v3203_v32  ;;  %v1442_v29 = vmul.f32 %v1435_v0, %v3206_v33 }
 0x2d3   : > { %v1414_v54 = vpop.permute.xlu1 %1413  ;;  %1596 = vmatpush1.bf16.msra.mxu1 %v1523_v24 }
 0x2d4   : > { %v1416_v12 = vpop.permute.xlu0 %1415  ;;  %1597 = vmatprep.subr.bf16.mxu1 %v1526_v3 }
 0x2d5   : > { %v1420_v28 = vsel %vm772_vm6, %v1414_v54, %v1416_v12  ;;  %v1436_v31 = vsel %vm772_vm6, %v1416_v12, %v1414_v54 }
 0x2d6   : > { %v1443_v56 = vmul.f32 %v1420_v28, %v3203_v32  ;;  %v1444_v43 = vmul.f32 %v1436_v31, %v3206_v33  ;;  %v2668_v32 = vld [vmem:[%s4052_s5 + $0x1c] ss:$12 sps:$4 sm:$0xff]  }
 0x2d7   : > { %v1446_v48 = vpop.permute.xlu1 %1445  ;;  %1598 = vmatpush1.bf16.msra.mxu1 %v1525_v19 }
 0x2d8   : > { %v1448_v60 = vpop.permute.xlu0 %1447  ;;  %v1528_v30 = vpack.c.bf16 %v1444_v43, %v1442_v29  ;;  %v1527_v44 = vpack.c.bf16 %v1443_v56, %v1441_v40 }
 0x2d9   : > { %v1461_v8 = vsel %vm825_vm7, %v1446_v48, %v1448_v60  ;;  %v1477_v46 = vsel %vm825_vm7, %v1448_v60, %v1446_v48 }
 0x2da   : > { %1599 = vmatprep.subr.bf16.mxu1 %v1528_v30  ;;  %v1481_v34 = vmul.f32 %v3227_v61, %v1461_v8  ;;  %v1482_v10 = vmul.f32 %v3232_v62, %v1477_v46 }
 0x2db   : > { %v1450_v42 = vpop.permute.xlu1 %1449  ;;  %1600 = vmatpush1.bf16.msra.mxu1 %v1527_v44 }
 0x2dc   : > { %v1452_v33 = vpop.permute.xlu0 %1451 }
 0x2dd   : > { %v1462_v36 = vsel %vm825_vm7, %v1450_v42, %v1452_v33  ;;  %v1478_v63 = vsel %vm825_vm7, %v1452_v33, %v1450_v42 }
 0x2de   : > { %v1483_v41 = vmul.f32 %v3227_v61, %v1462_v36  ;;  %v1484_v38 = vmul.f32 %v3232_v62, %v1478_v63  ;;  %1602 = vmatmul.mubr.bf16.vlgmr.msra.gmra.mrb[0].mxu1 %v2665_v37 }
 0x2df   : > { %v1454_v39 = vpop.permute.xlu1 %1453  ;;  %1611 = vmatprep.mubr.bf16.mxu1 %v2668_v32 }
 0x2e0   : > { %v1529_v13 = vpack.c.bf16 %v1483_v41, %v1481_v34  ;;  %v1456_v55 = vpop.permute.xlu0 %1455  ;;  %v1530_v49 = vpack.c.bf16 %v1484_v38, %v1482_v10  ;;  %v2748_v34 = vmov 0.0|0.0   ;;  %v2750_v10 = vmov 0.0  }
 0x2e1   : > { %v1463_v47 = vsel %vm825_vm7, %v1454_v39, %v1456_v55  ;;  %v1479_v58 = vsel %vm825_vm7, %v1456_v55, %v1454_v39  ;;  %2602 = vmatprep.subr.bf16.mxu0 %v2748_v34  ;;  %2591 = vmatprep.mubr.msk.f32.mxu0 %vm2749_vm9, %v2750_v10 }
 0x2e2   : > { %1622 = vmatprep.subr.bf16.mxu1 %v1530_v49  ;;  %v1485_v57 = vmul.f32 %v3227_v61, %v1463_v47  ;;  %v1486_v51 = vmul.f32 %v3232_v62, %v1479_v58 }
 0x2e3   : > { %v1458_v7 = vpop.permute.xlu1 %1457  ;;  %1623 = vmatpush1.bf16.msra.mxu1 %v1529_v13 }
 0x2e4   : > { %v1460_v9 = vpop.permute.xlu0 %1459 }
 0x2e5   : > { %v1464_v6 = vsel %vm825_vm7, %v1458_v7, %v1460_v9  ;;  %v1480_v14 = vsel %vm825_vm7, %v1460_v9, %v1458_v7 }
 0x2e6   : > { %v1487_v52 = vmul.f32 %v3227_v61, %v1464_v6  ;;  %v1488_v53 = vmul.f32 %v3232_v62, %v1480_v14  ;;  %1612 = vmatmul.mubr.bf16.gmra.mrb[4].mxu1 %v2670_v2  ;;  %v2672_v61 = vld [vmem:[%s4052_s5 + $0x20] ss:$12 sps:$4 sm:$0xff]  }
 0x2e7   : > { %1654 = vmatprep.mubr.bf16.mxu1 %v2747_v22 }
 0x2e8   : > { %v1531_v25 = vpack.c.bf16 %v1487_v52, %v1485_v57  ;;  %v1532_v50 = vpack.c.bf16 %v1488_v53, %v1486_v51 }
 0x2ea   : > { %1624 = vmatprep.subr.bf16.mxu1 %v1532_v50  ;;  %v1772_v50 = vld [vmem:[%s4055_s8] sm:$0x3] }
 0x2eb   : > { %1625 = vmatpush1.bf16.msra.mxu1 %v1531_v25 }
 0x2ee   : > { %2538 = vmatmul.mubr.msk.bf16.vlgmr.msra.gmra.mrb[0].mxu1 %vm936_vm8, %v2671_v1  ;;  %v1847_v1 = vld [vmem:[%s4056_s9] sm:$0xff] }
 0x2ef   : > { %1664 = vmatprep.mubr.bf16.mxu1 %v2747_v22 }
 0x2f4   : > { %v1682_v62 = vpop.permute.xlu1 %1681 }
 0x2f5   : > { %v1687_v17 = vpop.permute.xlu0 %1686 }
 0x2f6   : > { %2539 = vmatmul.mubr.msk.bf16.gmra.mrb[4].mxu1 %vm936_vm8, %v2672_v61 }
 0x2f7   : > { %2596 = vmatprep.mubr.msk.f32.mxu1 %vm1851_vm10, %v1847_v1 }
 0x2f8   : > { %v1714_v26 = vpop.permute.xlu1 %1713 }
 0x2f9   : > { %v1719_v18 = vpop.permute.xlu0 %1718 }
 0x2fc   : > { %v1692_v22 = vpop.permute.xlu1 %1691 }
 0x2fd   : > { %v1697_v3 = vpop.permute.xlu0 %1696 }
 0x300   : > { %v1724_v19 = vpop.permute.xlu1 %1723 }
 0x301   : > { %v1729_v44 = vpop.permute.xlu0 %1728 }
 0x3c1   : > { %v1656_v21 = vpop.f32.mrb[0].mxu1 }
 0x3c2   : > { %v1699_v23 = vmul.f32 %v1682_v62, %v1656_v21  ;;  %v1658_v16 = vpop.f32.mrb[1].mxu1  ;;  %v1850_v21 = vld [vmem:[%s4056_s9 + $0x18] sm:$0xff] }
 0x3c3   : > { %v1700_v4 = vmul.f32 %v1682_v62, %v1658_v16  ;;  %v1660_v15 = vpop.f32.mrb[2].mxu1 }
 0x3c4   : > { %v3663_v5 = vadd.f32 %v1714_v26, %v1699_v23  ;;  %v1701_v45 = vmul.f32 %v1687_v17, %v1660_v15  ;;  %v1662_v20 = vpop.f32.mrb[3].mxu1 }
 0x3c5   : > { %v3665_v24 = vadd.f32 %v1714_v26, %v1700_v4  ;;  %v1702_v27 = vmul.f32 %v1687_v17, %v1662_v20  ;;  %v1848_v26 = vld [vmem:[%s4056_s9 + $0x8] sm:$0xff] }
 0x3c6   : > { %v3667_v59 = vadd.f32 %v1719_v18, %v1701_v45 }
 0x3c7   : > { %v3669_v35 = vadd.f32 %v1719_v18, %v1702_v27  ;;  %v1756_v0 = vmax.f32 %v3663_v5, %v3665_v24  ;;  %v1739_v54 = vadd.f32 %v3665_v24, %v3663_v5  ;;  %v1849_v18 = vld [vmem:[%s4056_s9 + $0x10] sm:$0xff] }
 0x3c9   : > { %1757 = vmax.xlane.f32.xlu0 %v1756_v0  ;;  %1740 = vadd.xlane.f32.xlu1 %v1739_v54  ;;  %v1666_v12 = vpop.f32.mrb[4].mxu1  ;;  %v1759_v56 = vmax.f32 %v3667_v59, %v3669_v35  ;;  %v1742_v43 = vadd.f32 %v3669_v35, %v3667_v59 }
 0x3ca   : > { %v1703_v28 = vmul.f32 %v1692_v22, %v1666_v12  ;;  %v1668_v31 = vpop.f32.mrb[5].mxu1 }
 0x3cb   : > { %v1704_v40 = vmul.f32 %v1692_v22, %v1668_v31  ;;  %v1670_v29 = vpop.f32.mrb[6].mxu1 }
 0x3cc   : > { %v3679_v48 = vadd.f32 %v1724_v19, %v1703_v28  ;;  %v1705_v60 = vmul.f32 %v1697_v3, %v1670_v29  ;;  %v1672_v30 = vpop.f32.mrb[7].mxu1 }
 0x3cd   : > { %v3681_v37 = vadd.f32 %v1724_v19, %v1704_v40  ;;  %v1706_v8 = vmul.f32 %v1697_v3, %v1672_v30  ;;  %1760 = vmax.xlane.f32.xlu1 %v1759_v56  ;;  %1743 = vadd.xlane.f32.xlu0 %v1742_v43 }
 0x3ce   : > { %v3683_v46 = vadd.f32 %v1729_v44, %v1705_v60 }
 0x3cf   : > { %v3685_v42 = vadd.f32 %v1729_v44, %v1706_v8  ;;  %v1745_v32 = vadd.f32 %v3681_v37, %v3679_v48  ;;  %v1762_v36 = vmax.f32 %v3679_v48, %v3681_v37 }
 0x3d1   : > { %1746 = vadd.xlane.f32.xlu0 %v1745_v32  ;;  %v1748_v33 = vadd.f32 %v3685_v42, %v3683_v46  ;;  %v1765_v63 = vmax.f32 %v3683_v46, %v3685_v42 }
 0x3d3   : > { %1749 = vadd.xlane.f32.xlu1 %v1748_v33 }
 0x3d5   : > { %1763 = vmax.xlane.f32.xlu0 %v1762_v36 }
 0x3d7   : > { %1766 = vmax.xlane.f32.xlu1 %v1765_v63 }
 0x456   : > { %v1758_v41 = vpop.xlane.xlu0 %1757  ;;  %v1741_v38 = vpop.xlane.xlu1 %1740 }
 0x457   : > { %v1752_v39 = vmul.f32 0.00390625, %v1741_v38 }
 0x459   : > { %v1768_v2 = vsel %vm601_vm3, %v1752_v39, %v1758_v41 }
 0x45a   : > { %v1744_v13 = vpop.xlane.xlu0 %1743  ;;  %v1761_v49 = vpop.xlane.xlu1 %1760 }
 0x45b   : > { %v1753_v55 = vmul.f32 0.00390625, %v1744_v13 }
 0x45d   : > { %v1769_v47 = vsel %vm601_vm3, %v1753_v55, %v1761_v49 }
 0x45e   : > { %v2603_v58 = vpack.c.bf16 %v1769_v47, %v1768_v2  ;;  %v1747_v7 = vpop.xlane.xlu0 %1746 }
 0x45f   : > { %v1754_v14 = vmul.f32 0.00390625, %v1747_v7 }
 0x460   : > { %2604 = vmatpush3.bf16.msra.mxu0 %v2603_v58  ;;  %v1750_v9 = vpop.xlane.xlu1 %1749 }
 0x461   : > { %2605 = vmatprep.subr.bf16.mxu0 %v2748_v34  ;;  %v1755_v57 = vmul.f32 0.00390625, %v1750_v9 }
 0x462   : > { %v1764_v6 = vpop.xlane.xlu0 %1763 }
 0x463   : > { %v1770_v52 = vsel %vm601_vm3, %v1754_v14, %v1764_v6 }
 0x464   : > { %v1767_v51 = vpop.xlane.xlu1 %1766 }
 0x465   : > { %v1771_v53 = vsel %vm601_vm3, %v1755_v57, %v1767_v51 }
 0x466   : > { %v2606_v25 = vpack.c.bf16 %v1771_v53, %v1770_v52 }
 0x468   : > { %2607 = vmatpush3.bf16.msra.mxu0 %v2606_v25 }
 0x46b   : > { %2592 = vmatmul.mubr.msk.f32.vlgmr.msra.gmra.mrb[8].mxu0 %vm936_vm8, %v1772_v50 }
 0x53e   : > { %v1842_v61 = vpop.f32.mrb[8].mxu0 }
 0x53f   : > { %v1846_v62 = vmax.f32 %v1842_v61, 0.0  ;;  %v2593_v17 = vpop.f32.mrb[9].mxu0 }
 0x541   : > { %2594 = vmatprep.subr.msk.mxu1 %vm1864_vm11, %v1846_v62 }
 0x542   : > { %2595 = vmatpush3.msk.msra.mxu1 %vm1864_vm11, %v1846_v62 }
 0x543   : > { %2597 = vmatmul.mubr.msk.f32.vlgmr.msra.gmra.mrb[8].mxu1 %vm1851_vm10, %v1848_v26 }
 0x544   : > { %2599 = vmatprep.mubr.msk.f32.mxu1 %vm1851_vm10, %v1849_v18 }
 0x547   : > { %2600 = vmatmul.mubr.msk.f32.gmra.mrb[10].mxu1 %vm1851_vm10, %v1850_v21 }
 0x616   : > { %v2598_v23 = vpop.f32.mrb[8].mxu1 }
 0x617   : > { %1959 = vrot.lane.b32.xlu1 %v2598_v23, %s2743_s14  ;;  %v1934_v16 = vpop.f32.mrb[9].mxu1 }
 0x618   : > { %1957 = vrot.lane.b32.xlu0 %v1934_v16, %s2743_s14 }
 0x61a   : > { %v2601_v4 = vpop.f32.mrb[10].mxu1 }
 0x61b   : > { %v1944_v15 = vpop.f32.mrb[11].mxu1 }
 0x61c   : > { %1963 = vrot.lane.b32.xlu0 %v2601_v4, %s2743_s14  ;;  %1961 = vrot.lane.b32.xlu1 %v1944_v15, %s2743_s14 }
 0x689   : > { %v1960_v45 = vpop.permute.xlu1 %1959 }
 0x68a   : > { %v1970_v20 = vadd.f32 %v2598_v23, %v1960_v45  ;;  %v1958_v22 = vpop.permute.xlu0 %1957 }
 0x68b   : > { %v1969_v27 = vadd.f32 %v1958_v22, %v1934_v16 }
 0x68c   : > { %v2547_v3 = vmul.f32 -1.442695, %v1970_v20 }
 0x68d   : > { %v2546_v0 = vmul.f32 -1.442695, %v1969_v27 }
 0x68e   : > { %2673 = vpow2.f32 %v2547_v3  ;;  %v1964_v54 = vpop.permute.xlu0 %1963  ;;  %v1962_v12 = vpop.permute.xlu1 %1961 }
 0x68f   : > { %2675 = vpow2.f32 %v2546_v0  ;;  %v1972_v28 = vadd.f32 %v2601_v4, %v1964_v54  ;;  %v1971_v31 = vadd.f32 %v1962_v12, %v1944_v15 }
 0x691   : > { %v2549_v19 = vmul.f32 -1.442695, %v1972_v28  ;;  %v2548_v40 = vmul.f32 -1.442695, %v1971_v31 }
 0x693   : > { %2677 = vpow2.f32 %v2549_v19 }
 0x694   : > { %2679 = vpow2.f32 %v2548_v40 }
 0x698   : > { %v2674_v29 = vpop.eup %2673 }
 0x699   : > { %v2676_v56 = vpop.eup %2675  ;;  %v1986_v43 = vadd.f32 1.0, %v2674_v29 }
 0x69a   : > { %v1985_v60 = vadd.f32 1.0, %v2676_v56 }
 0x69b   : > { %2681 = vrcp.f32 %v1986_v43 }
 0x69c   : > { %2683 = vrcp.f32 %v1985_v60 }
 0x69d   : > { %v2678_v30 = vpop.eup %2677 }
 0x69e   : > { %v2680_v44 = vpop.eup %2679  ;;  %v1988_v8 = vadd.f32 1.0, %v2678_v30 }
 0x69f   : > { %v1987_v32 = vadd.f32 1.0, %v2680_v44 }
 0x6a0   : > { %2685 = vrcp.f32 %v1988_v8 }
 0x6a1   : > { %2687 = vrcp.f32 %v1987_v32 }
 0x6a5   : > { %v2682_v33 = vpop.eup %2681 }
 0x6a6   : > { %v2684_v36 = vpop.eup %2683  ;;  %2004 = vperm.xlu0 %2655, %v2682_v33  }
 0x6a7   : > { %1999 = vperm.xlu1 %2656, %v2684_v36  }
 0x6aa   : > { %v2686_v63 = vpop.eup %2685 }
 0x6ab   : > { %v2688_v34 = vpop.eup %2687  ;;  %2014 = vperm.xlu0 %2655, %v2686_v63  }
 0x6ac   : > { %2009 = vperm.xlu1 %2656, %v2688_v34   ;;  %v3850_v34 = vld [vmem:[%s4048_s1] sm:$0xff] }
 0x725   : > { %v2005_v10 = vpop.permute.xlu0 %2004 }
 0x726   : > { %v2000_v41 = vpop.permute.xlu1 %1999  ;;  %v3720_v39 = vmul.f32 %v2005_v10, %v3667_v59  ;;  %v3723_v13 = vmul.f32 %v2005_v10, %v3669_v35 }
 0x727   : > { %v3732_v47 = vmul.f32 %v2000_v41, %v3663_v5  ;;  %v3735_v58 = vmul.f32 %v2000_v41, %v3665_v24 }
 0x72a   : > { %v2015_v38 = vpop.permute.xlu0 %2014 }
 0x72b   : > { %v3726_v55 = vmul.f32 %v2015_v38, %v3683_v46  ;;  %v3729_v49 = vmul.f32 %v2015_v38, %v3685_v42  ;;  %v2010_v2 = vpop.permute.xlu1 %2009  ;;  %v2114_v38 = vrot.slane %v3850_v34, 1 }
 0x72c   : > { %v3738_v7 = vmul.f32 %v2010_v2, %v3679_v48  ;;  %v3741_v59 = vmul.f32 %v2010_v2, %v3681_v37  ;;  %v2025_v48 = vadd.f32 %v3720_v39, %v3732_v47  ;;  %v2034_v37 = vadd.f32 %v3723_v13, %v3735_v58  ;;  %v3859_v2 = vld [vmem:[%s4048_s1 + $0x8] sm:$0xff] }
 0x72d   : > { %v2047_v35 = vmax.f32 %v3720_v39, %v3726_v55  ;;  %v2056_v46 = vmax.f32 %v3723_v13, %v3729_v49 }
 0x72e   : > { %v2046_v42 = vmax.f32 %v3732_v47, %v3738_v7  ;;  %v2055_v5 = vmax.f32 %v3735_v58, %v3741_v59  ;;  %v2026_v57 = vadd.f32 %v2025_v48, %v3738_v7  ;;  %v2035_v51 = vadd.f32 %v2034_v37, %v3741_v59 }
 0x72f   : > { %v2153_v48 = vrot.slane %v3859_v2, 2 }
 0x730   : > { %v2048_v24 = vmax.f32 %v2046_v42, %v2047_v35  ;;  %v2057_v9 = vmax.f32 %v2055_v5, %v2056_v46  ;;  %v2027_v1 = vadd.f32 %v2026_v57, %v3726_v55  ;;  %v2036_v61 = vadd.f32 %v2035_v51, %v3729_v49 }
 0x731   : > { %v2115_v35 = vrot.slane %v3859_v2, 1  ;;  %v2191_v57 = vrot.slane %v3859_v2, 3 }
 0x732   : > { %v2049_v6 = vrot.slane %v2048_v24, 4  ;;  %v2058_v14 = vrot.slane %v2057_v9, 4  ;;  %v2028_v21 = vrot.slane %v2027_v1, 4  ;;  %v2037_v23 = vrot.slane %v2036_v61, 4 }
 0x734   : > { %v2050_v52 = vmax.f32 %v2048_v24, %v2049_v6  ;;  %v2059_v53 = vmax.f32 %v2057_v9, %v2058_v14  ;;  %v2029_v15 = vadd.f32 %v2028_v21, %v2027_v1  ;;  %v2038_v45 = vadd.f32 %v2037_v23, %v2036_v61 }
 0x735   : > { %v2152_v9 = vrot.slane %v3850_v34, 2  ;;  %v2190_v14 = vrot.slane %v3850_v34, 3 }
 0x736   : > { %v2051_v25 = vrot.slane %v2050_v52, 2  ;;  %v2060_v50 = vrot.slane %v2059_v53, 2  ;;  %v2030_v20 = vrot.slane %v2029_v15, 2  ;;  %v2039_v22 = vrot.slane %v2038_v45, 2 }
 0x738   : > { %v2052_v62 = vmax.f32 %v2050_v52, %v2051_v25  ;;  %v2061_v17 = vmax.f32 %v2059_v53, %v2060_v50  ;;  %v2031_v27 = vadd.f32 %v2030_v20, %v2029_v15  ;;  %v2040_v3 = vadd.f32 %v2039_v22, %v2038_v45 }
 0x739   : > { %v2256_v52 = vrot.slane %v3850_v34, 5  ;;  %v2257_v50 = vrot.slane %v3859_v2, 5 }
 0x73a   : > { %v2053_v26 = vrot.slane %v2052_v62, 1  ;;  %v2062_v18 = vrot.slane %v2061_v17, 1  ;;  %v2032_v0 = vrot.slane %v2031_v27, 1  ;;  %v2041_v54 = vrot.slane %v2040_v3, 1 }
 0x73c   : > { %v3759_v16 = vmax.f32 %v2052_v62, %v2053_v26  ;;  %v3761_v4 = vmax.f32 %v2061_v17, %v2062_v18  ;;  %v2033_v12 = vadd.f32 %v2032_v0, %v2031_v27  ;;  %v2042_v28 = vadd.f32 %v2041_v54, %v2040_v3 }
 0x73e   : > { %2085 = vrot.lane.b32.xlu1 %v3761_v4, %s2739_s29  ;;  %2089 = vrot.lane.b32.xlu0 %v3759_v16, %s2739_s29  ;;  %v3787_v31 = vmul.f32 0.03125, %v2033_v12  ;;  %v2045_v19 = vmul.f32 0.03125, %v2042_v28  ;;  %v2233_v10 = vmul.f32 %v3850_v34, %v3759_v16  ;;  %v2234_v24 = vmul.f32 %v3859_v2, %v3761_v4 }
 0x740   : > { %v2220_v6 = vmul.f32 %v3859_v2, %v2045_v19  ;;  %v2219_v21 = vmul.f32 %v3850_v34, %v3787_v31 }
 0x742   : > { %2126 = vrot.lane.b32.xlu1 %v3761_v4, %s2740_s30  ;;  %2129 = vrot.lane.b32.xlu0 %v3759_v16, %s2740_s30 }
 0x746   : > { %2164 = vrot.lane.b32.xlu1 %v3761_v4, %s2741_s12  ;;  %2167 = vrot.lane.b32.xlu0 %v3759_v16, %s2741_s12 }
 0x74a   : > { %2202 = vrot.lane.b32.xlu1 %v3761_v4, %s2742_s13  ;;  %2205 = vrot.lane.b32.xlu0 %v3759_v16, %s2742_s13 }
 0x74e   : > { %2268 = vrot.lane.b32.xlu1 %v3759_v16, %s2743_s14  ;;  %2270 = vrot.lane.b32.xlu0 %v3761_v4, %s2743_s14 }
 0x752   : > { %2306 = vrot.lane.b32.xlu1 %v3759_v16, %s2744_s15  ;;  %2308 = vrot.lane.b32.xlu0 %v3761_v4, %s2744_s15 }
 0x756   : > { %2066 = vrot.lane.b32.xlu1 %v2045_v19, %s2739_s29  ;;  %2070 = vrot.lane.b32.xlu0 %v3787_v31, %s2739_s29  ;;  %s3821_s29 = sld [smem:[#allocation2 + $0xd]] }
 0x75a   : > { %2103 = vrot.lane.b32.xlu1 %v2045_v19, %s2740_s30  ;;  %2106 = vrot.lane.b32.xlu0 %v3787_v31, %s2740_s30  ;;  %s3823_s30 = sld [smem:[#allocation2 + $0x9]] }
 0x75c   : > { %v2235_v41 = vstv %s3821_s29  ;;  %s3944_s29 = sld [smem:[#allocation2 + $0x5]] }
 0x75d   : > { %v3884_v1 = vmul.f32 %v2235_v41, %v2233_v10  ;;  %v3888_v18 = vmul.f32 %v2235_v41, %v2234_v24  ;;  %v2158_v24 = vstv %s3874_s19  ;;  %s400_s19 = scalar_lea.vmem %s4058_s11, %s4061_s24 }
 0x75e   : > { %2143 = vrot.lane.b32.xlu1 %v2045_v19, %s2741_s12  ;;  %2146 = vrot.lane.b32.xlu0 %v3787_v31, %s2741_s12  ;;  %s3825_s12 = sld [smem:[#allocation2 + $0x4]] }
 0x75f   : > { %v2240_v12 = vrot.slane %v3884_v1, 4 }
 0x760   : > { %v2097_v36 = vstv %s3823_s30  ;;  %s3946_s30 = sld [smem:[#allocation2 + $0x6]] }
 0x762   : > { %2181 = vrot.lane.b32.xlu1 %v2045_v19, %s2742_s13  ;;  %2184 = vrot.lane.b32.xlu0 %v3787_v31, %s2742_s13  ;;  %s3827_s13 = sld [smem:[#allocation2 + $0xa]] }
 0x764   : > { %v2221_v63 = vstv %s3825_s12  ;;  %s3973_s12 = sld [smem:[#allocation2 + $0x10]] }
 0x765   : > { %v3897_v15 = vmul.f32 %v2221_v63, %v2220_v6 }
 0x766   : > { %2344 = vrot.lane.b32.xlu1 %v3759_v16, %s2745_s16  ;;  %2346 = vrot.lane.b32.xlu0 %v3761_v4, %s2745_s16 }
 0x768   : > { %v2137_v46 = vstv %s3827_s13  ;;  %s3975_s13 = sld [smem:[#allocation2 + $0x7]] }
 0x76a   : > { %2247 = vrot.lane.b32.xlu1 %v3787_v31, %s2743_s14  ;;  %2249 = vrot.lane.b32.xlu0 %v2045_v19, %s2743_s14  ;;  %s3833_s14 = sld [smem:[#allocation2 + $0xb]] }
 0x76e   : > { %2285 = vrot.lane.b32.xlu1 %v3787_v31, %s2744_s15  ;;  %2287 = vrot.lane.b32.xlu0 %v2045_v19, %s2744_s15  ;;  %s3835_s15 = sld [smem:[#allocation2 + $0xc]] }
 0x770   : > { %v2175_v37 = vstv %s3833_s14  ;;  %s3995_s14 = sld [smem:[#allocation2 + $0x8]] }
 0x772   : > { %2323 = vrot.lane.b32.xlu1 %v3787_v31, %s2745_s16  ;;  %2325 = vrot.lane.b32.xlu0 %v2045_v19, %s2745_s16  ;;  %s3841_s16 = sld [smem:[#allocation2]] }
 0x774   : > { %v2213_v51 = vstv %s3835_s15  ;;  %s4007_s15 = sld [smem:[#allocation2 + $0x11]] }
 0x776   : > { %2361 = vrot.lane.b32.xlu1 %v3787_v31, %s2746_s21  ;;  %2363 = vrot.lane.b32.xlu0 %v2045_v19, %s2746_s21 }
 0x778   : > { %v2078_v23 = vstv %s3841_s16 }
 0x77a   : > { %2378 = vrot.lane.b32.xlu1 %v3759_v16, %s2746_s21  ;;  %2380 = vrot.lane.b32.xlu0 %v3761_v4, %s2746_s21  ;;  %s3844_s21 = sld [smem:[#allocation2 + $0xe]] }
 0x780   : > { %v2279_v54 = vstv %s3844_s21 }
 0x7b0   : > { %v2086_v40 = vpop.permute.xlu1 %2085  ;;  %v2090_v29 = vpop.permute.xlu0 %2089 }
 0x7b1   : > { %v2091_v53 = vsel %vm442_vm0, %v2090_v29, %v2086_v40  ;;  %v2094_v25 = vsel %vm442_vm0, %v2086_v40, %v2090_v29 }
 0x7b2   : > { %v2095_v45 = vmul.f32 %v3850_v34, %v2094_v25  ;;  %v2096_v20 = vmul.f32 %v3859_v2, %v2091_v53 }
 0x7b4   : > { %v2127_v56 = vpop.permute.xlu1 %2126  ;;  %v2130_v43 = vpop.permute.xlu0 %2129  ;;  %v2098_v6 = vmul.f32 %v2097_v36, %v2095_v45  ;;  %v2099_v53 = vmul.f32 %v2097_v36, %v2096_v20 }
 0x7b5   : > { %v2131_v61 = vsel %vm495_vm1, %v2130_v43, %v2127_v56  ;;  %v2134_v62 = vsel %vm495_vm1, %v2127_v56, %v2130_v43  ;;  %v2120_v43 = vstv %s3872_s27 }
 0x7b6   : > { %v2135_v3 = vmul.f32 %v2134_v62, %v2114_v38  ;;  %v2136_v0 = vmul.f32 %v2131_v61, %v2115_v35 }
 0x7b8   : > { %v2165_v60 = vpop.permute.xlu1 %2164  ;;  %v2168_v30 = vpop.permute.xlu0 %2167  ;;  %v2138_v62 = vmul.f32 %v2137_v46, %v2135_v3 }
 0x7b9   : > { %v2169_v28 = vsel %vm548_vm2, %v2168_v30, %v2165_v60  ;;  %v2172_v31 = vsel %vm548_vm2, %v2165_v60, %v2168_v30 }
 0x7ba   : > { %v2174_v60 = vmul.f32 %v2169_v28, %v2153_v48 }
 0x7bc   : > { %v3829_v44 = vpop.permute.xlu1 %2202  ;;  %v3831_v8 = vpop.permute.xlu0 %2205 }
 0x7c0   : > { %v3837_v32 = vpop.permute.xlu1 %2268  ;;  %v3839_v33 = vpop.permute.xlu0 %2270 }
 0x7c4   : > { %v3863_v42 = vpop.permute.xlu1 %2306  ;;  %v3865_v5 = vpop.permute.xlu0 %2308 }
 0x7c8   : > { %v2067_v17 = vpop.permute.xlu1 %2066  ;;  %v2071_v26 = vpop.permute.xlu0 %2070 }
 0x7c9   : > { %v2072_v16 = vsel %vm442_vm0, %v2071_v26, %v2067_v17  ;;  %v2075_v4 = vsel %vm442_vm0, %v2067_v17, %v2071_v26  ;;  %v2139_v17 = vmul.f32 %v2137_v46, %v2136_v0  ;;  %v2173_v26 = vmul.f32 %v2172_v31, %v2152_v9 }
 0x7ca   : > { %v2076_v22 = vmul.f32 %v3850_v34, %v2075_v4  ;;  %v2077_v27 = vmul.f32 %v3859_v2, %v2072_v16  ;;  %v2177_v31 = vmul.f32 %v2175_v37, %v2174_v60 }
 0x7cb   : > { %v2176_v28 = vmul.f32 %v2175_v37, %v2173_v26 }
 0x7cc   : > { %v2079_v19 = vmul.f32 %v2078_v23, %v2076_v22  ;;  %v2080_v40 = vmul.f32 %v2078_v23, %v2077_v27  ;;  %v2104_v29 = vpop.permute.xlu1 %2103  ;;  %v2107_v56 = vpop.permute.xlu0 %2106 }
 0x7cd   : > { %v2108_v10 = vsel %vm495_vm1, %v2107_v56, %v2104_v29  ;;  %v2111_v41 = vsel %vm495_vm1, %v2104_v29, %v2107_v56 }
 0x7ce   : > { %v2118_v25 = vmul.f32 %v2114_v38, %v2111_v41  ;;  %v2119_v61 = vmul.f32 %v2115_v35, %v2108_v10  ;;  %v2100_v30 = vadd.f32 %v2098_v6, %v2079_v19  ;;  %v2101_v23 = vadd.f32 %v2099_v53, %v2080_v40 }
 0x7cf   : > { %v2207_v38 = vsel %vm601_vm3, %v3831_v8, %v3829_v44  ;;  %v2210_v35 = vsel %vm601_vm3, %v3829_v44, %v3831_v8  ;;  %v2196_v19 = vstv %s3904_s25  ;;  %v2222_v44 = vmul.f32 %v2221_v63, %v2219_v21 }
 0x7d0   : > { %v2121_v16 = vmul.f32 %v2120_v43, %v2118_v25  ;;  %v2122_v4 = vmul.f32 %v2120_v43, %v2119_v61  ;;  %v2144_v45 = vpop.permute.xlu1 %2143  ;;  %v2147_v36 = vpop.permute.xlu0 %2146  ;;  %v2211_v41 = vmul.f32 %v2210_v35, %v2190_v14  ;;  %v2272_v53 = vsel %vm666_vm4, %v3837_v32, %v3839_v33 }
 0x7d1   : > { %v2148_v46 = vsel %vm548_vm2, %v2147_v36, %v2144_v45  ;;  %v2151_v20 = vsel %vm548_vm2, %v2144_v45, %v2147_v36  ;;  %v2276_v25 = vsel %vm666_vm4, %v3839_v33, %v3837_v32  ;;  %v2294_v61 = vrot.slane %v3850_v34, 6 }
 0x7d2   : > { %v2123_v22 = vadd.f32 %v2121_v16, %v2100_v30  ;;  %v2124_v27 = vadd.f32 %v2122_v4, %v2101_v23  ;;  %v2156_v3 = vmul.f32 %v2152_v9, %v2151_v20  ;;  %v2157_v0 = vmul.f32 %v2153_v48, %v2148_v46 }
 0x7d3   : > { %v2212_v9 = vmul.f32 %v2207_v38, %v2191_v57  ;;  %v2317_v16 = vstv %s3923_s20  ;;  %v2227_v4 = vrot.slane %v3897_v15, 4  ;;  %v2226_v45 = vrot.slane %v2222_v44, 4 }
 0x7d4   : > { %v2140_v8 = vadd.f32 %v2138_v62, %v2123_v22  ;;  %v2141_v40 = vadd.f32 %v2139_v17, %v2124_v27  ;;  %v2159_v29 = vmul.f32 %v2158_v24, %v2156_v3  ;;  %v2160_v56 = vmul.f32 %v2158_v24, %v2157_v0  ;;  %v2182_v43 = vpop.permute.xlu1 %2181  ;;  %v2185_v10 = vpop.permute.xlu0 %2184 }
 0x7d5   : > { %v2186_v48 = vsel %vm601_vm3, %v2185_v10, %v2182_v43  ;;  %v2189_v6 = vsel %vm601_vm3, %v2182_v43, %v2185_v10  ;;  %v2241_v62 = vrot.slane %v3888_v18, 4  ;;  %v2214_v36 = vmul.f32 %v2213_v51, %v2211_v41 }
 0x7d6   : > { %v2161_v63 = vadd.f32 %v2159_v29, %v2140_v8  ;;  %v2162_v37 = vadd.f32 %v2160_v56, %v2141_v40  ;;  %v2194_v21 = vmul.f32 %v2190_v14, %v2189_v6  ;;  %v2195_v24 = vmul.f32 %v2191_v57, %v2186_v48 }
 0x7d7   : > { %v2295_v57 = vrot.slane %v3859_v2, 6  ;;  %v2215_v32 = vmul.f32 %v2213_v51, %v2212_v9  ;;  %v2277_v18 = vmul.f32 %v2272_v53, %v2256_v52  ;;  %v2278_v35 = vmul.f32 %v2276_v25, %v2257_v50 }
 0x7d8   : > { %v2178_v17 = vadd.f32 %v2176_v28, %v2161_v63  ;;  %v2179_v26 = vadd.f32 %v2177_v31, %v2162_v37  ;;  %v2197_v14 = vmul.f32 %v2196_v19, %v2194_v21  ;;  %v2198_v60 = vmul.f32 %v2196_v19, %v2195_v24  ;;  %v2345_v30 = vpop.permute.xlu1 %2344  ;;  %v2347_v23 = vpop.permute.xlu0 %2346 }
 0x7d9   : > { %v2332_v46 = vrot.slane %v3850_v34, 7  ;;  %v2333_v20 = vrot.slane %v3859_v2, 7  ;;  %v2310_v51 = vsel %vm719_vm5, %v3863_v42, %v3865_v5  ;;  %v2314_v15 = vsel %vm719_vm5, %v3865_v5, %v3863_v42 }
 0x7da   : > { %v2199_v33 = vadd.f32 %v2197_v14, %v2178_v17  ;;  %v2200_v38 = vadd.f32 %v2198_v60, %v2179_v26  ;;  %v2262_v28 = vstv %s3944_s29  ;;  %v2300_v44 = vstv %s3946_s30 }
 0x7db   : > { %v2280_v42 = vmul.f32 %v2279_v54, %v2277_v18  ;;  %v2281_v5 = vmul.f32 %v2279_v54, %v2278_v35  ;;  %v2315_v43 = vmul.f32 %v2310_v51, %v2294_v61  ;;  %v2316_v10 = vmul.f32 %v2314_v15, %v2295_v57 }
 0x7dc   : > { %v2216_v22 = vadd.f32 %v2214_v36, %v2199_v33  ;;  %v2217_v27 = vadd.f32 %v2215_v32, %v2200_v38  ;;  %v2248_v3 = vpop.permute.xlu1 %2247  ;;  %v2250_v0 = vpop.permute.xlu0 %2249  ;;  %v2348_v2 = vsel %vm772_vm6, %v2345_v30, %v2347_v23  ;;  %v2372_v38 = vstv %s3995_s14 }
 0x7dd   : > { %v2251_v31 = vsel %vm666_vm4, %v2248_v3, %v2250_v0  ;;  %v2255_v19 = vsel %vm666_vm4, %v2250_v0, %v2248_v3  ;;  %v2318_v1 = vmul.f32 %v2317_v16, %v2315_v43  ;;  %v2319_v25 = vmul.f32 %v2317_v16, %v2316_v10 }
 0x7de   : > { %v2231_v8 = vadd.f32 %v2227_v4, %v2217_v27  ;;  %v2230_v40 = vadd.f32 %v2226_v45, %v2216_v22  ;;  %v2260_v29 = vmul.f32 %v2256_v52, %v2251_v31  ;;  %v2261_v56 = vmul.f32 %v2257_v50, %v2255_v19 }
 0x7df   : > { %v2352_v50 = vsel %vm772_vm6, %v2347_v23, %v2345_v30  ;;  %v2353_v30 = vmul.f32 %v2348_v2, %v2332_v46 }
 0x7e0   : > { %v2245_v41 = vadd.f32 %v2241_v62, %v2231_v8  ;;  %v2244_v9 = vadd.f32 %v2240_v12, %v2230_v40  ;;  %v2263_v48 = vmul.f32 %v2262_v28, %v2260_v29  ;;  %v2264_v34 = vmul.f32 %v2262_v28, %v2261_v56  ;;  %v2286_v52 = vpop.permute.xlu1 %2285  ;;  %v2288_v6 = vpop.permute.xlu0 %2287  ;;  %v2700_v8 = vld [vmem:[%s4048_s1 + $0x18] sm:$0x1] }
 0x7e1   : > { %v2289_v54 = vsel %vm719_vm5, %v2286_v52, %v2288_v6  ;;  %v2293_v63 = vsel %vm719_vm5, %v2288_v6, %v2286_v52  ;;  %v2355_v12 = vstv %s3973_s12  ;;  %v2338_v62 = vstv %s3975_s13 }
 0x7e2   : > { %v2265_v37 = vadd.f32 %v2263_v48, %v2244_v9  ;;  %v2266_v21 = vadd.f32 %v2264_v34, %v2245_v41  ;;  %v2298_v24 = vmul.f32 %v2294_v61, %v2289_v54  ;;  %v2299_v53 = vmul.f32 %v2295_v57, %v2293_v63 }
 0x7e3   : > { %v2354_v23 = vmul.f32 %v2352_v50, %v2333_v20  ;;  %v2356_v3 = vmul.f32 %v2355_v12, %v2353_v30  ;;  %v2389_v41 = vstv %s4007_s15 }
 0x7e4   : > { %v2283_v17 = vadd.f32 %v2281_v5, %v2266_v21  ;;  %v2282_v26 = vadd.f32 %v2280_v42, %v2265_v37  ;;  %v2301_v14 = vmul.f32 %v2300_v44, %v2298_v24  ;;  %v2302_v60 = vmul.f32 %v2300_v44, %v2299_v53  ;;  %v2324_v4 = vpop.permute.xlu1 %2323  ;;  %v2326_v45 = vpop.permute.xlu0 %2325 }
 0x7e5   : > { %v2327_v36 = vsel %vm772_vm6, %v2324_v4, %v2326_v45  ;;  %v2331_v32 = vsel %vm772_vm6, %v2326_v45, %v2324_v4  ;;  %v2357_v0 = vmul.f32 %v2355_v12, %v2354_v23 }
 0x7e6   : > { %v2303_v61 = vadd.f32 %v2301_v14, %v2282_v26  ;;  %v2304_v57 = vadd.f32 %v2302_v60, %v2283_v17  ;;  %v2336_v16 = vmul.f32 %v2332_v46, %v2327_v36  ;;  %v2337_v33 = vmul.f32 %v2333_v20, %v2331_v32  ;;  %v2699_v46 = vld [vmem:[%s4048_s1 + $0x10] sm:$0x1] }
 0x7e8   : > { %v2321_v18 = vadd.f32 %v2319_v25, %v2304_v57  ;;  %v2320_v35 = vadd.f32 %v2318_v1, %v2303_v61  ;;  %v2339_v51 = vmul.f32 %v2338_v62, %v2336_v16  ;;  %v2340_v15 = vmul.f32 %v2338_v62, %v2337_v33  ;;  %v2362_v22 = vpop.permute.xlu1 %2361  ;;  %v2364_v27 = vpop.permute.xlu0 %2363  ;;  %v2702_v57 = vld [vmem:[%s2841_s28 + $0x10] sm:$0xff]  ;;  %v2703_v16 = vld [vmem:[%s2841_s28 + $0x20] sm:$0xff] }
 0x7e9   : > { %v2365_v28 = vsel %vm825_vm7, %v2362_v22, %v2364_v27  ;;  %v2369_v31 = vsel %vm825_vm7, %v2364_v27, %v2362_v22 }
 0x7ea   : > { %v2341_v19 = vadd.f32 %v2339_v51, %v2320_v35  ;;  %v2342_v44 = vadd.f32 %v2340_v15, %v2321_v18  ;;  %v2370_v20 = vmul.f32 %v2699_v46, %v2365_v28  ;;  %v2371_v40 = vmul.f32 %v2700_v8, %v2369_v31  ;;  %v2707_v18 = vld [vmem:[%s2841_s28 + $0x28] sm:$0xff]  ;;  %v2708_v35 = vld [vmem:[%s2841_s28 + $0x38] sm:$0xff] }
 0x7ec   : > { %v2359_v29 = vadd.f32 %v2357_v0, %v2342_v44  ;;  %v2358_v56 = vadd.f32 %v2356_v3, %v2341_v19  ;;  %v2373_v42 = vmul.f32 %v2372_v38, %v2370_v20  ;;  %v2374_v5 = vmul.f32 %v2372_v38, %v2371_v40  ;;  %v2379_v43 = vpop.permute.xlu1 %2378  ;;  %v2381_v10 = vpop.permute.xlu0 %2380 }
 0x7ed   : > { %v2382_v9 = vsel %vm825_vm7, %v2379_v43, %v2381_v10  ;;  %v2386_v48 = vsel %vm825_vm7, %v2381_v10, %v2379_v43 }
 0x7ee   : > { %v2387_v34 = vmul.f32 %v2699_v46, %v2382_v9  ;;  %v2388_v52 = vmul.f32 %v2700_v8, %v2386_v48  ;;  %v2375_v6 = vadd.f32 %v2373_v42, %v2358_v56  ;;  %v2376_v2 = vadd.f32 %v2374_v5, %v2359_v29 }
 0x7f0   : > { %v2390_v50 = vmul.f32 %v2389_v41, %v2387_v34  ;;  %v2391_v54 = vmul.f32 %v2389_v41, %v2388_v52 }
 0x7f2   : > { %v2392_v63 = vadd.f32 %v2390_v50, %v2375_v6  ;;  %v2393_v37 = vadd.f32 %v2391_v54, %v2376_v2 }
 0x7f4   : > { %v2567_v21 = vmul.f32 -1.442695, %v2392_v63  ;;  %v2568_v24 = vmul.f32 -1.442695, %v2393_v37 }
 0x7f6   : > { %2689 = vpow2.f32 %v2567_v21 }
 0x7f7   : > { %2691 = vpow2.f32 %v2568_v24 }
 0x800   : > { %v2690_v53 = vpop.eup %2689 }
 0x801   : > { %v2692_v1 = vpop.eup %2691  ;;  %v2400_v25 = vadd.f32 1.0, %v2690_v53 }
 0x802   : > { %v2401_v12 = vadd.f32 1.0, %v2692_v1 }
 0x803   : > { %2693 = vrcp.f32 %v2400_v25 }
 0x804   : > { %2695 = vrcp.f32 %v2401_v12 }
 0x80d   : > { %v2694_v62 = vpop.eup %2693 }
 0x80e   : > { %v2696_v17 = vpop.eup %2695  ;;  %v2409_v26 = vrot.slane %v2694_v62, %v2985_v11 }
 0x80f   : > { %v2413_v14 = vrot.slane %v2696_v17, %v2985_v11 }
 0x810   : > { %v2414_v60 = vmul.f32 %v2409_v26, %v3732_v47  ;;  %v2416_v4 = vmul.f32 %v2409_v26, %v3720_v39  ;;  %v2418_v45 = vmul.f32 %v2409_v26, %v3738_v7  ;;  %v2420_v30 = vmul.f32 %v2409_v26, %v3726_v55  ;;  %v2701_v47 = vld [vmem:[%s2841_s28] sm:$0xff]  ;;  %v2704_v7 = vld [vmem:[%s2841_s28 + $0x30] sm:$0xff] }
 0x811   : > { %v2415_v23 = vmul.f32 %v2413_v14, %v3735_v58  ;;  %v2417_v36 = vmul.f32 %v2413_v14, %v3723_v13  ;;  %v2419_v32 = vmul.f32 %v2413_v14, %v3741_v59  ;;  %v2421_v11 = vmul.f32 %v2413_v14, %v3729_v49  ;;  %v2705_v13 = vld [vmem:[%s2841_s28 + $0x8] sm:$0xff]  ;;  %v2706_v58 = vld [vmem:[%s2841_s28 + $0x18] sm:$0xff] }
 0x812   : > { %v2422_v61 = vadd.f32 %v2701_v47, %v2414_v60  ;;  %v2424_v39 = vadd.f32 %v2702_v57, %v2416_v4  ;;  %v2426_v33 = vadd.f32 %v2703_v16, %v2418_v45  ;;  %v2428_v38 = vadd.f32 %v2704_v7, %v2420_v30 }
 0x813   : > { %v2423_v55 = vadd.f32 %v2705_v13, %v2415_v23  ;;  %v2425_v59 = vadd.f32 %v2706_v58, %v2417_v36  ;;  %v2427_v49 = vadd.f32 %v2707_v18, %v2419_v32  ;;  %v2429_v51 = vadd.f32 %v2708_v35, %v2421_v11 }
 0x814   : > { %v2430_v15 = vmax.f32 %v2422_v61, 0.0  ;;  %v2432_v22 = vmax.f32 %v2424_v39, 0.0  ;;  %v2434_v27 = vmax.f32 %v2426_v33, 0.0  ;;  %v2436_v3 = vmax.f32 %v2428_v38, 0.0 }
 0x815   : > { %v2431_v0 = vmax.f32 %v2423_v55, 0.0  ;;  %v2433_v28 = vmax.f32 %v2425_v59, 0.0  ;;  %v2435_v31 = vmax.f32 %v2427_v49, 0.0  ;;  %v2437_v19 = vmax.f32 %v2429_v51, 0.0 }
 0x816   : > { %2438 = vst [vmem:[%s400_s19] sm:$0xff] %v2430_v15  ;;  %2440 = vst [vmem:[%s400_s19 + $0x10] sm:$0xff] %v2432_v22 }
 0x817   : > { %2442 = vst [vmem:[%s400_s19 + $0x20] sm:$0xff] %v2434_v27  ;;  %2444 = vst [vmem:[%s400_s19 + $0x30] sm:$0xff] %v2436_v3 }
 0x818   : > { %2439 = vst [vmem:[%s400_s19 + $0x8] sm:$0xff] %v2431_v0  ;;  %2441 = vst [vmem:[%s400_s19 + $0x18] sm:$0xff] %v2433_v28 }
 0x819   : > { %2443 = vst [vmem:[%s400_s19 + $0x28] sm:$0xff] %v2435_v31  ;;  %2445 = vst [vmem:[%s400_s19 + $0x38] sm:$0xff] %v2437_v19 }
 0x81a PF: > { %s22_s17 = sadd.s32 1, %s2736_s17  }
 0x81b   : > { %p19_p1 = scmp.ge.s32.totalorder %s22_s17, 4  }
 0x81d   :  { %21 = sbr.rel (!%p19_p1) target bundleno = 1 (0x1), region = 99 }
 0x824   :  { %2467 = vsyncpa [#allocation3], 1 }
 0x825   :  { %2469 = vsyncpa [#allocation3 + $0x1], 1 }

</bundles_post_ra>
